<compile_context>
chip_gen: v7x
topology: tpu7x:2x2x1
jax: 0.10.0
libtpu: 0.0.40
codegen_flags: <defaults>
</compile_context>

<pallas_src>
import jax
import jax.numpy as jnp
from jax.experimental import pallas as pl
from jax.experimental.pallas import tpu as pltpu

# ---------------- model hyper-parameters --------------------------------------
B = 2            # batch
C_IN = 3         # input channels
IMG = 32         # input spatial size (H = W)
PATCH = 8        # patch size -> 4x4 = 16 tokens per image
EMBED = 32       # embed dim
DEPTH = 2        # transformer blocks
HEADS = 4        # attention heads
DH = EMBED // HEADS
MLP_HIDDEN = 4 * EMBED
NUM_JOINTS = 8
HEAD_PAD = 128   # lane-dense head output width (>= NUM_JOINTS)
LN_EPS = 1e-6
N_TOK = (IMG // PATCH) ** 2          # 16 tokens per image
PATCH_DIM = C_IN * PATCH * PATCH     # 192
NEG_INF = -1e30
INV_SQRT2 = 0.7071067811865476


# ---------------------------- kernel helpers ----------------------------------
def _ln(x):
    """LayerNorm without affine (gamma/beta are folded into the next matmul)."""
    mu = jnp.mean(x, axis=-1, keepdims=True)
    xc = x - mu
    var = jnp.mean(xc * xc, axis=-1, keepdims=True)
    return xc * jax.lax.rsqrt(var + LN_EPS)


def _gelu(x):
    """Exact (erf) GELU, PyTorch default, in f32."""
    return 0.5 * x * (1.0 + jax.lax.erf(x * INV_SQRT2))


def _mm(x_f32, w_bf16, b_f32=None):
    """bf16 MXU matmul with f32 accumulation (+ optional f32 bias)."""
    y = jnp.dot(x_f32.astype(jnp.bfloat16), w_bf16,
                preferred_element_type=jnp.float32)
    return y if b_f32 is None else y + b_f32


# ---------------------------- fused Pallas kernel ------------------------------
def _vitpose_kernel(
    xp_ref, pos_ref, pe_w_ref,
    qkv_w_ref, qkv_b_ref, proj_w_ref, proj_b_ref,
    fc1_w_ref, fc1_b_ref, fc2_w_ref, fc2_b_ref,
    head_w_ref, head_b_ref, qk_mask_ref, attn_bias_ref,
    out_ref):
    """One image per grid step; activations stay in VMEM for the full pass."""
    # patch embedding (Conv2d k=stride=PATCH as im2col matmul); conv bias is
    # folded into `pos` host-side.
    tokens = _mm(xp_ref[...], pe_w_ref[...]) + pos_ref[...]        # (N, D) f32

    qk_mask = qk_mask_ref[...]        # (H*N, D): head-column selection mask
    attn_bias = attn_bias_ref[...]    # (H*N, H*N): 0 on diag blocks, -1e30 off

    for d in range(DEPTH):
        # ---- attention sub-block: x = x + proj(attn(LN(x))) ------------------
        # LN affine + 1/sqrt(dh) scale are folded into qkv weights/biases.
        xhat = _ln(tokens)
        qkv = _mm(xhat, qkv_w_ref[d], qkv_b_ref[d])                # (N, 3D)

        # Block-diagonal masked attention over all heads at once.
        qkv_e = jnp.concatenate([qkv] * HEADS, axis=0)             # (H*N, 3D)
        q_e = qkv_e[:, :EMBED] * qk_mask                           # (H*N, D)
        k_e = qkv_e[:, EMBED:2 * EMBED] * qk_mask
        v_e = qkv_e[:, 2 * EMBED:] * qk_mask

        # scores: contract the feature axis of both operands (no transpose).
        s = jax.lax.dot_general(q_e, k_e, (((1,), (1,)), ((), ())),
                                preferred_element_type=jnp.float32)  # (HN, HN)
        s = s + attn_bias
        s = s - jnp.max(s, axis=-1, keepdims=True)
        p = jnp.exp(s)
        p = p * pl.reciprocal(jnp.sum(p, axis=-1, keepdims=True), approx=True)

        o_e = jnp.dot(p, v_e, preferred_element_type=jnp.float32)   # (HN, D)
        # fold the per-head row blocks back onto the token rows (columns are
        # already head-disjoint because v_e was column-masked).
        o = o_e[0:N_TOK, :]
        for h in range(1, HEADS):
            o = o + o_e[h * N_TOK:(h + 1) * N_TOK, :]               # (N, D)

        tokens = tokens + _mm(o, proj_w_ref[d], proj_b_ref[d])

        # ---- MLP sub-block: x = x + fc2(gelu(fc1(LN(x)))) --------------------
        xhat = _ln(tokens)
        hmid = _gelu(_mm(xhat, fc1_w_ref[d], fc1_b_ref[d]))
        tokens = tokens + _mm(hmid, fc2_w_ref[d], fc2_b_ref[d])

    # ---- final LN (folded into head) + 1x1-conv head, lane-padded store -------
    xhat = _ln(tokens)
    out_ref[...] = _mm(xhat, head_w_ref[...], head_b_ref[...]).astype(out_ref.dtype)


# ---------------------------- parameter init (PyTorch layout) ------------------
def init_params(key):
    ks = jax.random.split(key, 8 + DEPTH)
    std = 0.02
    params = {
        "patch_w": std * jax.random.normal(ks[0], (EMBED, C_IN, PATCH, PATCH), jnp.float32),
        "patch_b": jnp.zeros((EMBED,), jnp.float32),
        "pos_embed": std * jax.random.normal(ks[1], (1, N_TOK, EMBED), jnp.float32),
        "lnf_g": jnp.ones((EMBED,), jnp.float32),
        "lnf_b": jnp.zeros((EMBED,), jnp.float32),
        # head: Conv2d(EMBED, NUM_JOINTS, 1) stored as (in, out): y = x @ W + b
        "head_w": std * jax.random.normal(ks[2], (EMBED, NUM_JOINTS), jnp.float32),
        "head_b": jnp.zeros((NUM_JOINTS,), jnp.float32),
        "blocks": [],
    }
    for d in range(DEPTH):
        bk = jax.random.split(ks[8 + d], 4)
        params["blocks"].append({
            "ln1_g": jnp.ones((EMBED,), jnp.float32),
            "ln1_b": jnp.zeros((EMBED,), jnp.float32),
            "qkv_w": std * jax.random.normal(bk[0], (EMBED, 3 * EMBED), jnp.float32),
            "qkv_b": jnp.zeros((3 * EMBED,), jnp.float32),
            "proj_w": std * jax.random.normal(bk[1], (EMBED, EMBED), jnp.float32),
            "proj_b": jnp.zeros((EMBED,), jnp.float32),
            "ln2_g": jnp.ones((EMBED,), jnp.float32),
            "ln2_b": jnp.zeros((EMBED,), jnp.float32),
            "fc1_w": std * jax.random.normal(bk[2], (EMBED, MLP_HIDDEN), jnp.float32),
            "fc1_b": jnp.zeros((MLP_HIDDEN,), jnp.float32),
            "fc2_w": std * jax.random.normal(bk[3], (MLP_HIDDEN, EMBED), jnp.float32),
            "fc2_b": jnp.zeros((EMBED,), jnp.float32),
        })
    return params


# ---------------------------- one-time parameter packing -----------------------
def prepare_params(params):
    """Fold LN affines / attention scale into matmul weights, cast to bf16,
    stack over depth, pad the head to 128 lanes, and build the block-diagonal
    attention masks.  Runs ONCE, outside the per-call forward."""
    def fold_ln(g, b, w, bias):
        return w * g[:, None], b @ w + bias

    scale = DH ** -0.5
    pe_w = params["patch_w"].reshape(EMBED, PATCH_DIM).T.astype(jnp.bfloat16)
    pos = (params["pos_embed"].reshape(N_TOK, EMBED)
           + params["patch_b"].reshape(1, EMBED)).astype(jnp.float32)

    qkv_w, qkv_b, proj_w, proj_b = [], [], [], []
    fc1_w, fc1_b, fc2_w, fc2_b = [], [], [], []
    for blk in params["blocks"]:
        w, b = fold_ln(blk["ln1_g"], blk["ln1_b"], blk["qkv_w"], blk["qkv_b"])
        w = w.at[:, :EMBED].multiply(scale)     # fold 1/sqrt(dh) into q weights
        b = b.at[:EMBED].multiply(scale)
        qkv_w.append(w); qkv_b.append(b)
        proj_w.append(blk["proj_w"]); proj_b.append(blk["proj_b"])
        w, b = fold_ln(blk["ln2_g"], blk["ln2_b"], blk["fc1_w"], blk["fc1_b"])
        fc1_w.append(w); fc1_b.append(b)
        fc2_w.append(blk["fc2_w"]); fc2_b.append(blk["fc2_b"])

    head_w, head_b = fold_ln(params["lnf_g"], params["lnf_b"],
                             params["head_w"], params["head_b"])
    head_w = jnp.pad(head_w, ((0, 0), (0, HEAD_PAD - NUM_JOINTS)))
    head_b = jnp.pad(head_b, (0, HEAD_PAD - NUM_JOINTS))

    head_ids = jnp.repeat(jnp.arange(HEADS), N_TOK)            # (H*N,)
    col_head = jnp.arange(EMBED) // DH                         # (D,)
    qk_mask = (head_ids[:, None] == col_head[None, :]).astype(jnp.float32)
    attn_bias = jnp.where(head_ids[:, None] == head_ids[None, :],
                          0.0, NEG_INF).astype(jnp.float32)

    packed = {
        "pe_w": pe_w,
        "pos": pos,
        "qkv_w": jnp.stack(qkv_w).astype(jnp.bfloat16),
        "qkv_b": jnp.stack(qkv_b).reshape(DEPTH, 1, 3 * EMBED).astype(jnp.float32),
        "proj_w": jnp.stack(proj_w).astype(jnp.bfloat16),
        "proj_b": jnp.stack(proj_b).reshape(DEPTH, 1, EMBED).astype(jnp.float32),
        "fc1_w": jnp.stack(fc1_w).astype(jnp.bfloat16),
        "fc1_b": jnp.stack(fc1_b).reshape(DEPTH, 1, MLP_HIDDEN).astype(jnp.float32),
        "fc2_w": jnp.stack(fc2_w).astype(jnp.bfloat16),
        "fc2_b": jnp.stack(fc2_b).reshape(DEPTH, 1, EMBED).astype(jnp.float32),
        "head_w": head_w.astype(jnp.bfloat16),
        "head_b": head_b.reshape(1, HEAD_PAD).astype(jnp.float32),
        "qk_mask": qk_mask,
        "attn_bias": attn_bias,
    }
    return jax.tree_util.tree_map(jnp.asarray, packed)


# ---------------------------- forward pass -------------------------------------
def _full_spec(a):
    nd = a.ndim
    return pl.BlockSpec(a.shape, lambda b, _nd=nd: (0,) * _nd)


def vitpose_forward(x, pk):
    """x: (B, C, H, W) f32 NCHW (like PyTorch). Returns heatmaps (B, K, Hp, Wp)."""
    Bx, Cx, H, W = x.shape
    Hp, Wp = H // PATCH, W // PATCH
    n_tok = Hp * Wp

    # one-time layout glue: im2col patchify (Conv2d with k = stride = PATCH)
    xp = x.reshape(Bx, Cx, Hp, PATCH, Wp, PATCH)
    xp = xp.transpose(0, 2, 4, 1, 3, 5).reshape(Bx * n_tok, Cx * PATCH * PATCH)

    inputs = [xp, pk["pos"], pk["pe_w"],
              pk["qkv_w"], pk["qkv_b"], pk["proj_w"], pk["proj_b"],
              pk["fc1_w"], pk["fc1_b"], pk["fc2_w"], pk["fc2_b"],
              pk["head_w"], pk["head_b"], pk["qk_mask"], pk["attn_bias"]]

    in_specs = [pl.BlockSpec((n_tok, Cx * PATCH * PATCH), lambda b: (b, 0))]
    in_specs += [_full_spec(a) for a in inputs[1:]]

    out = pl.pallas_call(
        _vitpose_kernel,
        out_shape=jax.ShapeDtypeStruct((Bx * n_tok, HEAD_PAD), jnp.float32),
        grid=(Bx,),                                   # one image per grid step
        in_specs=in_specs,
        out_specs=pl.BlockSpec((n_tok, HEAD_PAD), lambda b: (b, 0)),
        compiler_params=pltpu.CompilerParams(
            dimension_semantics=("parallel",)),       # v7x: one image per TC
    )(*inputs)

    # slice off lane padding, reshape to heatmaps (B, K, Hp, Wp)
    hm = out[:, :NUM_JOINTS].reshape(Bx, Hp, Wp, NUM_JOINTS).transpose(0, 3, 1, 2)
    return hm


# ---------------------------- pure-JAX f32 reference ----------------------------
def vitpose_reference(x, params):
    Bx, Cx, H, W = x.shape
    Hp, Wp = H // PATCH, W // PATCH
    n = Hp * Wp
    xp = x.reshape(Bx, Cx, Hp, PATCH, Wp, PATCH)
    xp = xp.transpose(0, 2, 4, 1, 3, 5).reshape(Bx, n, Cx * PATCH * PATCH)
    tok = (xp @ params["patch_w"].reshape(EMBED, -1).T
           + params["patch_b"] + params["pos_embed"])

    def ln(v, g, b):
        mu = v.mean(-1, keepdims=True)
        var = ((v - mu) ** 2).mean(-1, keepdims=True)
        return (v - mu) / jnp.sqrt(var + LN_EPS) * g + b

    for blk in params["blocks"]:
        h = ln(tok, blk["ln1_g"], blk["ln1_b"])
        qkv = (h @ blk["qkv_w"] + blk["qkv_b"]).reshape(Bx, n, 3, HEADS, DH)
        qkv = qkv.transpose(2, 0, 3, 1, 4)
        q, k, v = qkv[0], qkv[1], qkv[2]                      # (B,H,n,dh)
        s = jnp.einsum("bhqd,bhkd->bhqk", q, k) * (DH ** -0.5)
        p = jax.nn.softmax(s, axis=-1)
        a = jnp.einsum("bhqk,bhkd->bhqd", p, v)
        a = a.transpose(0, 2, 1, 3).reshape(Bx, n, EMBED)
        tok = tok + a @ blk["proj_w"] + blk["proj_b"]
        h = ln(tok, blk["ln2_g"], blk["ln2_b"])
        h = h @ blk["fc1_w"] + blk["fc1_b"]
        h = 0.5 * h * (1.0 + jax.lax.erf(h * INV_SQRT2))
        tok = tok + h @ blk["fc2_w"] + blk["fc2_b"]

    tok = ln(tok, params["lnf_g"], params["lnf_b"])
    hm = tok @ params["head_w"] + params["head_b"]
    return hm.reshape(Bx, Hp, Wp, NUM_JOINTS).transpose(0, 3, 1, 2)


if __name__ == "__main__":
    key = jax.random.PRNGKey(0)
    k_in, k_par = jax.random.split(key)
    x = jax.random.normal(k_in, (B, C_IN, IMG, IMG), jnp.float32)   # NCHW input
    params = init_params(k_par)
    packed = prepare_params(params)        # one-time packing, outside forward

    fwd = jax.jit(vitpose_forward)
    out = jax.block_until_ready(fwd(x, packed))

    assert out.shape == (B, NUM_JOINTS, IMG // PATCH, IMG // PATCH), out.shape
    assert bool(jnp.all(jnp.isfinite(out)))

    ref = vitpose_reference(x, params)
    max_err = float(jnp.max(jnp.abs(out - ref)))
    assert max_err < 5e-2, f"max abs err vs f32 reference: {max_err}"
    print("KERNEL_OK")
</pallas_src>

<mosaic_0001>
module attributes {stable_mosaic.version = 11 : i64} {
  func.func @_vitpose_kernel(%arg0: i32, %arg1: memref<16x192xf32, #tpu.memory_space<vmem>>, %arg2: memref<16x32xf32, #tpu.memory_space<vmem>>, %arg3: memref<192x32xbf16, #tpu.memory_space<vmem>>, %arg4: memref<2x32x96xbf16, #tpu.memory_space<vmem>>, %arg5: memref<2x1x96xf32, #tpu.memory_space<vmem>>, %arg6: memref<2x32x32xbf16, #tpu.memory_space<vmem>>, %arg7: memref<2x1x32xf32, #tpu.memory_space<vmem>>, %arg8: memref<2x32x128xbf16, #tpu.memory_space<vmem>>, %arg9: memref<2x1x128xf32, #tpu.memory_space<vmem>>, %arg10: memref<2x128x32xbf16, #tpu.memory_space<vmem>>, %arg11: memref<2x1x32xf32, #tpu.memory_space<vmem>>, %arg12: memref<32x128xbf16, #tpu.memory_space<vmem>>, %arg13: memref<1x128xf32, #tpu.memory_space<vmem>>, %arg14: memref<64x32xf32, #tpu.memory_space<vmem>>, %arg15: memref<64x64xf32, #tpu.memory_space<vmem>>, %arg16: memref<16x128xf32, #tpu.memory_space<vmem>>) attributes {dimension_semantics = [#tpu.dimension_semantics<parallel>], iteration_bounds = array<i64: 2>, scalar_prefetch = 0 : i64, scratch_operands = 0 : i64, tpu.core_type = #tpu.core_type<tc>, window_params = [{transform_indices = @transform_0, window_bounds = array<i64: 16, 192>}, {pipeline_mode = #tpu.pipeline_mode<synchronous>, transform_indices = @transform_1, window_bounds = array<i64: 16, 32>}, {pipeline_mode = #tpu.pipeline_mode<synchronous>, transform_indices = @transform_2, window_bounds = array<i64: 192, 32>}, {pipeline_mode = #tpu.pipeline_mode<synchronous>, transform_indices = @transform_3, window_bounds = array<i64: 2, 32, 96>}, {pipeline_mode = #tpu.pipeline_mode<synchronous>, transform_indices = @transform_4, window_bounds = array<i64: 2, 1, 96>}, {pipeline_mode = #tpu.pipeline_mode<synchronous>, transform_indices = @transform_5, window_bounds = array<i64: 2, 32, 32>}, {pipeline_mode = #tpu.pipeline_mode<synchronous>, transform_indices = @transform_6, window_bounds = array<i64: 2, 1, 32>}, {pipeline_mode = #tpu.pipeline_mode<synchronous>, transform_indices = @transform_7, window_bounds = array<i64: 2, 32, 128>}, {pipeline_mode = #tpu.pipeline_mode<synchronous>, transform_indices = @transform_8, window_bounds = array<i64: 2, 1, 128>}, {pipeline_mode = #tpu.pipeline_mode<synchronous>, transform_indices = @transform_9, window_bounds = array<i64: 2, 128, 32>}, {pipeline_mode = #tpu.pipeline_mode<synchronous>, transform_indices = @transform_10, window_bounds = array<i64: 2, 1, 32>}, {pipeline_mode = #tpu.pipeline_mode<synchronous>, transform_indices = @transform_11, window_bounds = array<i64: 32, 128>}, {pipeline_mode = #tpu.pipeline_mode<synchronous>, transform_indices = @transform_12, window_bounds = array<i64: 1, 128>}, {pipeline_mode = #tpu.pipeline_mode<synchronous>, transform_indices = @transform_13, window_bounds = array<i64: 64, 32>}, {pipeline_mode = #tpu.pipeline_mode<synchronous>, transform_indices = @transform_14, window_bounds = array<i64: 64, 64>}, {transform_indices = @transform_15, window_bounds = array<i64: 16, 128>}]} {
    %c0 = arith.constant 0 : index
    %c0_0 = arith.constant 0 : index
    %0 = vector.load %arg1[%c0, %c0_0] : memref<16x192xf32, #tpu.memory_space<vmem>>, vector<16x192xf32>
    %c0_1 = arith.constant 0 : index
    %c0_2 = arith.constant 0 : index
    %1 = vector.load %arg3[%c0_1, %c0_2] : memref<192x32xbf16, #tpu.memory_space<vmem>>, vector<192x32xbf16>
    %2 = arith.truncf %0 : vector<16x192xf32> to vector<16x192xbf16>
    %cst = arith.constant dense<0.000000e+00> : vector<16x32xf32>
    %3 = tpu.matmul %2, %1, %cst {dimension_numbers = #tpu.dot_dimension_numbers<[1], [0], [0], [1], [0, 0, 1, 1], [], []>} : vector<16x192xbf16>, vector<192x32xbf16>, vector<16x32xf32> -> vector<16x32xf32>
    %c0_3 = arith.constant 0 : index
    %c0_4 = arith.constant 0 : index
    %4 = vector.load %arg2[%c0_3, %c0_4] : memref<16x32xf32, #tpu.memory_space<vmem>>, vector<16x32xf32>
    %5 = arith.addf %3, %4 : vector<16x32xf32>
    %c0_5 = arith.constant 0 : index
    %c0_6 = arith.constant 0 : index
    %6 = vector.load %arg14[%c0_5, %c0_6] : memref<64x32xf32, #tpu.memory_space<vmem>>, vector<64x32xf32>
    %c0_7 = arith.constant 0 : index
    %c0_8 = arith.constant 0 : index
    %7 = vector.load %arg15[%c0_7, %c0_8] : memref<64x64xf32, #tpu.memory_space<vmem>>, vector<64x64xf32>
    %cst_9 = arith.constant dense<0.000000e+00> : vector<16xf32>
    %8 = vector.multi_reduction <add>, %5, %cst_9 [1] : vector<16x32xf32> to vector<16xf32>
    %9 = vector.shape_cast %8 : vector<16xf32> to vector<16x1xf32>
    %cst_10 = arith.constant 3.200000e+01 : f32
    %10 = vector.broadcast %cst_10 : f32 to vector<16x1xf32>
    %11 = arith.divf %9, %10 : vector<16x1xf32>
    %12 = vector.broadcast %11 : vector<16x1xf32> to vector<16x32xf32>
    %13 = arith.subf %5, %12 : vector<16x32xf32>
    %14 = arith.mulf %13, %13 : vector<16x32xf32>
    %cst_11 = arith.constant dense<0.000000e+00> : vector<16xf32>
    %15 = vector.multi_reduction <add>, %14, %cst_11 [1] : vector<16x32xf32> to vector<16xf32>
    %16 = vector.shape_cast %15 : vector<16xf32> to vector<16x1xf32>
    %cst_12 = arith.constant 3.200000e+01 : f32
    %17 = vector.broadcast %cst_12 : f32 to vector<16x1xf32>
    %18 = arith.divf %16, %17 : vector<16x1xf32>
    %cst_13 = arith.constant 9.99999997E-7 : f32
    %19 = vector.broadcast %cst_13 : f32 to vector<16x1xf32>
    %20 = arith.addf %18, %19 : vector<16x1xf32>
    %21 = math.rsqrt %20 : vector<16x1xf32>
    %22 = vector.broadcast %21 : vector<16x1xf32> to vector<16x32xf32>
    %23 = arith.mulf %13, %22 : vector<16x32xf32>
    %c0_14 = arith.constant 0 : index
    %c0_15 = arith.constant 0 : index
    %c0_16 = arith.constant 0 : index
    %24 = vector.load %arg4[%c0_14, %c0_15, %c0_16] : memref<2x32x96xbf16, #tpu.memory_space<vmem>>, vector<1x32x96xbf16>
    %25 = vector.shape_cast %24 : vector<1x32x96xbf16> to vector<32x96xbf16>
    %c0_17 = arith.constant 0 : index
    %c0_18 = arith.constant 0 : index
    %c0_19 = arith.constant 0 : index
    %26 = vector.load %arg5[%c0_17, %c0_18, %c0_19] : memref<2x1x96xf32, #tpu.memory_space<vmem>>, vector<1x1x96xf32>
    %27 = vector.shape_cast %26 : vector<1x1x96xf32> to vector<1x96xf32>
    %28 = arith.truncf %23 : vector<16x32xf32> to vector<16x32xbf16>
    %cst_20 = arith.constant dense<0.000000e+00> : vector<16x96xf32>
    %29 = tpu.matmul %28, %25, %cst_20 {dimension_numbers = #tpu.dot_dimension_numbers<[1], [0], [0], [1], [0, 0, 1, 1], [], []>} : vector<16x32xbf16>, vector<32x96xbf16>, vector<16x96xf32> -> vector<16x96xf32>
    %30 = vector.broadcast %27 : vector<1x96xf32> to vector<16x96xf32>
    %31 = arith.addf %29, %30 : vector<16x96xf32>
    %32 = tpu.concatenate %31, %31, %31, %31 in 0 : vector<16x96xf32>, vector<16x96xf32>, vector<16x96xf32>, vector<16x96xf32> -> vector<64x96xf32>
    %33 = vector.extract_strided_slice %32 {offsets = [0, 0], sizes = [64, 32], strides = [1, 1]} : vector<64x96xf32> to vector<64x32xf32>
    %34 = arith.mulf %33, %6 : vector<64x32xf32>
    %35 = vector.extract_strided_slice %32 {offsets = [0, 32], sizes = [64, 32], strides = [1, 1]} : vector<64x96xf32> to vector<64x32xf32>
    %36 = arith.mulf %35, %6 : vector<64x32xf32>
    %37 = vector.extract_strided_slice %32 {offsets = [0, 64], sizes = [64, 32], strides = [1, 1]} : vector<64x96xf32> to vector<64x32xf32>
    %38 = arith.mulf %37, %6 : vector<64x32xf32>
    %cst_21 = arith.constant dense<0.000000e+00> : vector<64x64xf32>
    %39 = tpu.matmul %34, %36, %cst_21 {dimension_numbers = #tpu.dot_dimension_numbers<[1], [1], [0], [0], [0, 0, 1, 0], [], []>} : vector<64x32xf32>, vector<64x32xf32>, vector<64x64xf32> -> vector<64x64xf32>
    %40 = arith.addf %39, %7 : vector<64x64xf32>
    %cst_22 = arith.constant dense<0xFF800000> : vector<64xf32>
    %41 = vector.multi_reduction <maximumf>, %40, %cst_22 [1] : vector<64x64xf32> to vector<64xf32>
    %42 = vector.shape_cast %41 : vector<64xf32> to vector<64x1xf32>
    %43 = vector.broadcast %42 : vector<64x1xf32> to vector<64x64xf32>
    %44 = arith.subf %40, %43 : vector<64x64xf32>
    %45 = math.exp %44 : vector<64x64xf32>
    %cst_23 = arith.constant dense<0.000000e+00> : vector<64xf32>
    %46 = vector.multi_reduction <add>, %45, %cst_23 [1] : vector<64x64xf32> to vector<64xf32>
    %47 = vector.shape_cast %46 : vector<64xf32> to vector<64x1xf32>
    %48 = tpu.reciprocal %47 {approx = true} : vector<64x1xf32> -> vector<64x1xf32>
    %49 = vector.broadcast %48 : vector<64x1xf32> to vector<64x64xf32>
    %50 = arith.mulf %45, %49 : vector<64x64xf32>
    %cst_24 = arith.constant dense<0.000000e+00> : vector<64x32xf32>
    %51 = tpu.matmul %50, %38, %cst_24 {dimension_numbers = #tpu.dot_dimension_numbers<[1], [0], [0], [1], [0, 0, 1, 1], [], []>} : vector<64x64xf32>, vector<64x32xf32>, vector<64x32xf32> -> vector<64x32xf32>
    %52 = vector.extract_strided_slice %51 {offsets = [0, 0], sizes = [16, 32], strides = [1, 1]} : vector<64x32xf32> to vector<16x32xf32>
    %53 = vector.extract_strided_slice %51 {offsets = [16, 0], sizes = [16, 32], strides = [1, 1]} : vector<64x32xf32> to vector<16x32xf32>
    %54 = arith.addf %52, %53 : vector<16x32xf32>
    %55 = vector.extract_strided_slice %51 {offsets = [32, 0], sizes = [16, 32], strides = [1, 1]} : vector<64x32xf32> to vector<16x32xf32>
    %56 = arith.addf %54, %55 : vector<16x32xf32>
    %57 = vector.extract_strided_slice %51 {offsets = [48, 0], sizes = [16, 32], strides = [1, 1]} : vector<64x32xf32> to vector<16x32xf32>
    %58 = arith.addf %56, %57 : vector<16x32xf32>
    %c0_25 = arith.constant 0 : index
    %c0_26 = arith.constant 0 : index
    %c0_27 = arith.constant 0 : index
    %59 = vector.load %arg6[%c0_25, %c0_26, %c0_27] : memref<2x32x32xbf16, #tpu.memory_space<vmem>>, vector<1x32x32xbf16>
    %60 = vector.shape_cast %59 : vector<1x32x32xbf16> to vector<32x32xbf16>
    %c0_28 = arith.constant 0 : index
    %c0_29 = arith.constant 0 : index
    %c0_30 = arith.constant 0 : index
    %61 = vector.load %arg7[%c0_28, %c0_29, %c0_30] : memref<2x1x32xf32, #tpu.memory_space<vmem>>, vector<1x1x32xf32>
    %62 = vector.shape_cast %61 : vector<1x1x32xf32> to vector<1x32xf32>
    %63 = arith.truncf %58 : vector<16x32xf32> to vector<16x32xbf16>
    %cst_31 = arith.constant dense<0.000000e+00> : vector<16x32xf32>
    %64 = tpu.matmul %63, %60, %cst_31 {dimension_numbers = #tpu.dot_dimension_numbers<[1], [0], [0], [1], [0, 0, 1, 1], [], []>} : vector<16x32xbf16>, vector<32x32xbf16>, vector<16x32xf32> -> vector<16x32xf32>
    %65 = vector.broadcast %62 : vector<1x32xf32> to vector<16x32xf32>
    %66 = arith.addf %64, %65 : vector<16x32xf32>
    %67 = arith.addf %5, %66 : vector<16x32xf32>
    %cst_32 = arith.constant dense<0.000000e+00> : vector<16xf32>
    %68 = vector.multi_reduction <add>, %67, %cst_32 [1] : vector<16x32xf32> to vector<16xf32>
    %69 = vector.shape_cast %68 : vector<16xf32> to vector<16x1xf32>
    %cst_33 = arith.constant 3.200000e+01 : f32
    %70 = vector.broadcast %cst_33 : f32 to vector<16x1xf32>
    %71 = arith.divf %69, %70 : vector<16x1xf32>
    %72 = vector.broadcast %71 : vector<16x1xf32> to vector<16x32xf32>
    %73 = arith.subf %67, %72 : vector<16x32xf32>
    %74 = arith.mulf %73, %73 : vector<16x32xf32>
    %cst_34 = arith.constant dense<0.000000e+00> : vector<16xf32>
    %75 = vector.multi_reduction <add>, %74, %cst_34 [1] : vector<16x32xf32> to vector<16xf32>
    %76 = vector.shape_cast %75 : vector<16xf32> to vector<16x1xf32>
    %cst_35 = arith.constant 3.200000e+01 : f32
    %77 = vector.broadcast %cst_35 : f32 to vector<16x1xf32>
    %78 = arith.divf %76, %77 : vector<16x1xf32>
    %cst_36 = arith.constant 9.99999997E-7 : f32
    %79 = vector.broadcast %cst_36 : f32 to vector<16x1xf32>
    %80 = arith.addf %78, %79 : vector<16x1xf32>
    %81 = math.rsqrt %80 : vector<16x1xf32>
    %82 = vector.broadcast %81 : vector<16x1xf32> to vector<16x32xf32>
    %83 = arith.mulf %73, %82 : vector<16x32xf32>
    %c0_37 = arith.constant 0 : index
    %c0_38 = arith.constant 0 : index
    %c0_39 = arith.constant 0 : index
    %84 = vector.load %arg8[%c0_37, %c0_38, %c0_39] : memref<2x32x128xbf16, #tpu.memory_space<vmem>>, vector<1x32x128xbf16>
    %85 = vector.shape_cast %84 : vector<1x32x128xbf16> to vector<32x128xbf16>
    %c0_40 = arith.constant 0 : index
    %c0_41 = arith.constant 0 : index
    %c0_42 = arith.constant 0 : index
    %86 = vector.load %arg9[%c0_40, %c0_41, %c0_42] : memref<2x1x128xf32, #tpu.memory_space<vmem>>, vector<1x1x128xf32>
    %87 = vector.shape_cast %86 : vector<1x1x128xf32> to vector<1x128xf32>
    %88 = arith.truncf %83 : vector<16x32xf32> to vector<16x32xbf16>
    %cst_43 = arith.constant dense<0.000000e+00> : vector<16x128xf32>
    %89 = tpu.matmul %88, %85, %cst_43 {dimension_numbers = #tpu.dot_dimension_numbers<[1], [0], [0], [1], [0, 0, 1, 1], [], []>} : vector<16x32xbf16>, vector<32x128xbf16>, vector<16x128xf32> -> vector<16x128xf32>
    %90 = vector.broadcast %87 : vector<1x128xf32> to vector<16x128xf32>
    %91 = arith.addf %89, %90 : vector<16x128xf32>
    %cst_44 = arith.constant 5.000000e-01 : f32
    %92 = vector.broadcast %cst_44 : f32 to vector<16x128xf32>
    %93 = arith.mulf %92, %91 : vector<16x128xf32>
    %cst_45 = arith.constant 0.707106769 : f32
    %94 = vector.broadcast %cst_45 : f32 to vector<16x128xf32>
    %95 = arith.mulf %91, %94 : vector<16x128xf32>
    %96 = math.erf %95 : vector<16x128xf32>
    %cst_46 = arith.constant 1.000000e+00 : f32
    %97 = vector.broadcast %cst_46 : f32 to vector<16x128xf32>
    %98 = arith.addf %97, %96 : vector<16x128xf32>
    %99 = arith.mulf %93, %98 : vector<16x128xf32>
    %c0_47 = arith.constant 0 : index
    %c0_48 = arith.constant 0 : index
    %c0_49 = arith.constant 0 : index
    %100 = vector.load %arg10[%c0_47, %c0_48, %c0_49] : memref<2x128x32xbf16, #tpu.memory_space<vmem>>, vector<1x128x32xbf16>
    %101 = vector.shape_cast %100 : vector<1x128x32xbf16> to vector<128x32xbf16>
    %c0_50 = arith.constant 0 : index
    %c0_51 = arith.constant 0 : index
    %c0_52 = arith.constant 0 : index
    %102 = vector.load %arg11[%c0_50, %c0_51, %c0_52] : memref<2x1x32xf32, #tpu.memory_space<vmem>>, vector<1x1x32xf32>
    %103 = vector.shape_cast %102 : vector<1x1x32xf32> to vector<1x32xf32>
    %104 = arith.truncf %99 : vector<16x128xf32> to vector<16x128xbf16>
    %cst_53 = arith.constant dense<0.000000e+00> : vector<16x32xf32>
    %105 = tpu.matmul %104, %101, %cst_53 {dimension_numbers = #tpu.dot_dimension_numbers<[1], [0], [0], [1], [0, 0, 1, 1], [], []>} : vector<16x128xbf16>, vector<128x32xbf16>, vector<16x32xf32> -> vector<16x32xf32>
    %106 = vector.broadcast %103 : vector<1x32xf32> to vector<16x32xf32>
    %107 = arith.addf %105, %106 : vector<16x32xf32>
    %108 = arith.addf %67, %107 : vector<16x32xf32>
    %cst_54 = arith.constant dense<0.000000e+00> : vector<16xf32>
    %109 = vector.multi_reduction <add>, %108, %cst_54 [1] : vector<16x32xf32> to vector<16xf32>
    %110 = vector.shape_cast %109 : vector<16xf32> to vector<16x1xf32>
    %cst_55 = arith.constant 3.200000e+01 : f32
    %111 = vector.broadcast %cst_55 : f32 to vector<16x1xf32>
    %112 = arith.divf %110, %111 : vector<16x1xf32>
    %113 = vector.broadcast %112 : vector<16x1xf32> to vector<16x32xf32>
    %114 = arith.subf %108, %113 : vector<16x32xf32>
    %115 = arith.mulf %114, %114 : vector<16x32xf32>
    %cst_56 = arith.constant dense<0.000000e+00> : vector<16xf32>
    %116 = vector.multi_reduction <add>, %115, %cst_56 [1] : vector<16x32xf32> to vector<16xf32>
    %117 = vector.shape_cast %116 : vector<16xf32> to vector<16x1xf32>
    %cst_57 = arith.constant 3.200000e+01 : f32
    %118 = vector.broadcast %cst_57 : f32 to vector<16x1xf32>
    %119 = arith.divf %117, %118 : vector<16x1xf32>
    %cst_58 = arith.constant 9.99999997E-7 : f32
    %120 = vector.broadcast %cst_58 : f32 to vector<16x1xf32>
    %121 = arith.addf %119, %120 : vector<16x1xf32>
    %122 = math.rsqrt %121 : vector<16x1xf32>
    %123 = vector.broadcast %122 : vector<16x1xf32> to vector<16x32xf32>
    %124 = arith.mulf %114, %123 : vector<16x32xf32>
    %c1 = arith.constant 1 : index
    %c0_59 = arith.constant 0 : index
    %c0_60 = arith.constant 0 : index
    %125 = vector.load %arg4[%c1, %c0_59, %c0_60] : memref<2x32x96xbf16, #tpu.memory_space<vmem>>, vector<1x32x96xbf16>
    %126 = vector.shape_cast %125 : vector<1x32x96xbf16> to vector<32x96xbf16>
    %c1_61 = arith.constant 1 : index
    %c0_62 = arith.constant 0 : index
    %c0_63 = arith.constant 0 : index
    %127 = vector.load %arg5[%c1_61, %c0_62, %c0_63] : memref<2x1x96xf32, #tpu.memory_space<vmem>>, vector<1x1x96xf32>
    %128 = vector.shape_cast %127 : vector<1x1x96xf32> to vector<1x96xf32>
    %129 = arith.truncf %124 : vector<16x32xf32> to vector<16x32xbf16>
    %cst_64 = arith.constant dense<0.000000e+00> : vector<16x96xf32>
    %130 = tpu.matmul %129, %126, %cst_64 {dimension_numbers = #tpu.dot_dimension_numbers<[1], [0], [0], [1], [0, 0, 1, 1], [], []>} : vector<16x32xbf16>, vector<32x96xbf16>, vector<16x96xf32> -> vector<16x96xf32>
    %131 = vector.broadcast %128 : vector<1x96xf32> to vector<16x96xf32>
    %132 = arith.addf %130, %131 : vector<16x96xf32>
    %133 = tpu.concatenate %132, %132, %132, %132 in 0 : vector<16x96xf32>, vector<16x96xf32>, vector<16x96xf32>, vector<16x96xf32> -> vector<64x96xf32>
    %134 = vector.extract_strided_slice %133 {offsets = [0, 0], sizes = [64, 32], strides = [1, 1]} : vector<64x96xf32> to vector<64x32xf32>
    %135 = arith.mulf %134, %6 : vector<64x32xf32>
    %136 = vector.extract_strided_slice %133 {offsets = [0, 32], sizes = [64, 32], strides = [1, 1]} : vector<64x96xf32> to vector<64x32xf32>
    %137 = arith.mulf %136, %6 : vector<64x32xf32>
    %138 = vector.extract_strided_slice %133 {offsets = [0, 64], sizes = [64, 32], strides = [1, 1]} : vector<64x96xf32> to vector<64x32xf32>
    %139 = arith.mulf %138, %6 : vector<64x32xf32>
    %cst_65 = arith.constant dense<0.000000e+00> : vector<64x64xf32>
    %140 = tpu.matmul %135, %137, %cst_65 {dimension_numbers = #tpu.dot_dimension_numbers<[1], [1], [0], [0], [0, 0, 1, 0], [], []>} : vector<64x32xf32>, vector<64x32xf32>, vector<64x64xf32> -> vector<64x64xf32>
    %141 = arith.addf %140, %7 : vector<64x64xf32>
    %cst_66 = arith.constant dense<0xFF800000> : vector<64xf32>
    %142 = vector.multi_reduction <maximumf>, %141, %cst_66 [1] : vector<64x64xf32> to vector<64xf32>
    %143 = vector.shape_cast %142 : vector<64xf32> to vector<64x1xf32>
    %144 = vector.broadcast %143 : vector<64x1xf32> to vector<64x64xf32>
    %145 = arith.subf %141, %144 : vector<64x64xf32>
    %146 = math.exp %145 : vector<64x64xf32>
    %cst_67 = arith.constant dense<0.000000e+00> : vector<64xf32>
    %147 = vector.multi_reduction <add>, %146, %cst_67 [1] : vector<64x64xf32> to vector<64xf32>
    %148 = vector.shape_cast %147 : vector<64xf32> to vector<64x1xf32>
    %149 = tpu.reciprocal %148 {approx = true} : vector<64x1xf32> -> vector<64x1xf32>
    %150 = vector.broadcast %149 : vector<64x1xf32> to vector<64x64xf32>
    %151 = arith.mulf %146, %150 : vector<64x64xf32>
    %cst_68 = arith.constant dense<0.000000e+00> : vector<64x32xf32>
    %152 = tpu.matmul %151, %139, %cst_68 {dimension_numbers = #tpu.dot_dimension_numbers<[1], [0], [0], [1], [0, 0, 1, 1], [], []>} : vector<64x64xf32>, vector<64x32xf32>, vector<64x32xf32> -> vector<64x32xf32>
    %153 = vector.extract_strided_slice %152 {offsets = [0, 0], sizes = [16, 32], strides = [1, 1]} : vector<64x32xf32> to vector<16x32xf32>
    %154 = vector.extract_strided_slice %152 {offsets = [16, 0], sizes = [16, 32], strides = [1, 1]} : vector<64x32xf32> to vector<16x32xf32>
    %155 = arith.addf %153, %154 : vector<16x32xf32>
    %156 = vector.extract_strided_slice %152 {offsets = [32, 0], sizes = [16, 32], strides = [1, 1]} : vector<64x32xf32> to vector<16x32xf32>
    %157 = arith.addf %155, %156 : vector<16x32xf32>
    %158 = vector.extract_strided_slice %152 {offsets = [48, 0], sizes = [16, 32], strides = [1, 1]} : vector<64x32xf32> to vector<16x32xf32>
    %159 = arith.addf %157, %158 : vector<16x32xf32>
    %c1_69 = arith.constant 1 : index
    %c0_70 = arith.constant 0 : index
    %c0_71 = arith.constant 0 : index
    %160 = vector.load %arg6[%c1_69, %c0_70, %c0_71] : memref<2x32x32xbf16, #tpu.memory_space<vmem>>, vector<1x32x32xbf16>
    %161 = vector.shape_cast %160 : vector<1x32x32xbf16> to vector<32x32xbf16>
    %c1_72 = arith.constant 1 : index
    %c0_73 = arith.constant 0 : index
    %c0_74 = arith.constant 0 : index
    %162 = vector.load %arg7[%c1_72, %c0_73, %c0_74] : memref<2x1x32xf32, #tpu.memory_space<vmem>>, vector<1x1x32xf32>
    %163 = vector.shape_cast %162 : vector<1x1x32xf32> to vector<1x32xf32>
    %164 = arith.truncf %159 : vector<16x32xf32> to vector<16x32xbf16>
    %cst_75 = arith.constant dense<0.000000e+00> : vector<16x32xf32>
    %165 = tpu.matmul %164, %161, %cst_75 {dimension_numbers = #tpu.dot_dimension_numbers<[1], [0], [0], [1], [0, 0, 1, 1], [], []>} : vector<16x32xbf16>, vector<32x32xbf16>, vector<16x32xf32> -> vector<16x32xf32>
    %166 = vector.broadcast %163 : vector<1x32xf32> to vector<16x32xf32>
    %167 = arith.addf %165, %166 : vector<16x32xf32>
    %168 = arith.addf %108, %167 : vector<16x32xf32>
    %cst_76 = arith.constant dense<0.000000e+00> : vector<16xf32>
    %169 = vector.multi_reduction <add>, %168, %cst_76 [1] : vector<16x32xf32> to vector<16xf32>
    %170 = vector.shape_cast %169 : vector<16xf32> to vector<16x1xf32>
    %cst_77 = arith.constant 3.200000e+01 : f32
    %171 = vector.broadcast %cst_77 : f32 to vector<16x1xf32>
    %172 = arith.divf %170, %171 : vector<16x1xf32>
    %173 = vector.broadcast %172 : vector<16x1xf32> to vector<16x32xf32>
    %174 = arith.subf %168, %173 : vector<16x32xf32>
    %175 = arith.mulf %174, %174 : vector<16x32xf32>
    %cst_78 = arith.constant dense<0.000000e+00> : vector<16xf32>
    %176 = vector.multi_reduction <add>, %175, %cst_78 [1] : vector<16x32xf32> to vector<16xf32>
    %177 = vector.shape_cast %176 : vector<16xf32> to vector<16x1xf32>
    %cst_79 = arith.constant 3.200000e+01 : f32
    %178 = vector.broadcast %cst_79 : f32 to vector<16x1xf32>
    %179 = arith.divf %177, %178 : vector<16x1xf32>
    %cst_80 = arith.constant 9.99999997E-7 : f32
    %180 = vector.broadcast %cst_80 : f32 to vector<16x1xf32>
    %181 = arith.addf %179, %180 : vector<16x1xf32>
    %182 = math.rsqrt %181 : vector<16x1xf32>
    %183 = vector.broadcast %182 : vector<16x1xf32> to vector<16x32xf32>
    %184 = arith.mulf %174, %183 : vector<16x32xf32>
    %c1_81 = arith.constant 1 : index
    %c0_82 = arith.constant 0 : index
    %c0_83 = arith.constant 0 : index
    %185 = vector.load %arg8[%c1_81, %c0_82, %c0_83] : memref<2x32x128xbf16, #tpu.memory_space<vmem>>, vector<1x32x128xbf16>
    %186 = vector.shape_cast %185 : vector<1x32x128xbf16> to vector<32x128xbf16>
    %c1_84 = arith.constant 1 : index
    %c0_85 = arith.constant 0 : index
    %c0_86 = arith.constant 0 : index
    %187 = vector.load %arg9[%c1_84, %c0_85, %c0_86] : memref<2x1x128xf32, #tpu.memory_space<vmem>>, vector<1x1x128xf32>
    %188 = vector.shape_cast %187 : vector<1x1x128xf32> to vector<1x128xf32>
    %189 = arith.truncf %184 : vector<16x32xf32> to vector<16x32xbf16>
    %cst_87 = arith.constant dense<0.000000e+00> : vector<16x128xf32>
    %190 = tpu.matmul %189, %186, %cst_87 {dimension_numbers = #tpu.dot_dimension_numbers<[1], [0], [0], [1], [0, 0, 1, 1], [], []>} : vector<16x32xbf16>, vector<32x128xbf16>, vector<16x128xf32> -> vector<16x128xf32>
    %191 = vector.broadcast %188 : vector<1x128xf32> to vector<16x128xf32>
    %192 = arith.addf %190, %191 : vector<16x128xf32>
    %cst_88 = arith.constant 5.000000e-01 : f32
    %193 = vector.broadcast %cst_88 : f32 to vector<16x128xf32>
    %194 = arith.mulf %193, %192 : vector<16x128xf32>
    %cst_89 = arith.constant 0.707106769 : f32
    %195 = vector.broadcast %cst_89 : f32 to vector<16x128xf32>
    %196 = arith.mulf %192, %195 : vector<16x128xf32>
    %197 = math.erf %196 : vector<16x128xf32>
    %cst_90 = arith.constant 1.000000e+00 : f32
    %198 = vector.broadcast %cst_90 : f32 to vector<16x128xf32>
    %199 = arith.addf %198, %197 : vector<16x128xf32>
    %200 = arith.mulf %194, %199 : vector<16x128xf32>
    %c1_91 = arith.constant 1 : index
    %c0_92 = arith.constant 0 : index
    %c0_93 = arith.constant 0 : index
    %201 = vector.load %arg10[%c1_91, %c0_92, %c0_93] : memref<2x128x32xbf16, #tpu.memory_space<vmem>>, vector<1x128x32xbf16>
    %202 = vector.shape_cast %201 : vector<1x128x32xbf16> to vector<128x32xbf16>
    %c1_94 = arith.constant 1 : index
    %c0_95 = arith.constant 0 : index
    %c0_96 = arith.constant 0 : index
    %203 = vector.load %arg11[%c1_94, %c0_95, %c0_96] : memref<2x1x32xf32, #tpu.memory_space<vmem>>, vector<1x1x32xf32>
    %204 = vector.shape_cast %203 : vector<1x1x32xf32> to vector<1x32xf32>
    %205 = arith.truncf %200 : vector<16x128xf32> to vector<16x128xbf16>
    %cst_97 = arith.constant dense<0.000000e+00> : vector<16x32xf32>
    %206 = tpu.matmul %205, %202, %cst_97 {dimension_numbers = #tpu.dot_dimension_numbers<[1], [0], [0], [1], [0, 0, 1, 1], [], []>} : vector<16x128xbf16>, vector<128x32xbf16>, vector<16x32xf32> -> vector<16x32xf32>
    %207 = vector.broadcast %204 : vector<1x32xf32> to vector<16x32xf32>
    %208 = arith.addf %206, %207 : vector<16x32xf32>
    %209 = arith.addf %168, %208 : vector<16x32xf32>
    %cst_98 = arith.constant dense<0.000000e+00> : vector<16xf32>
    %210 = vector.multi_reduction <add>, %209, %cst_98 [1] : vector<16x32xf32> to vector<16xf32>
    %211 = vector.shape_cast %210 : vector<16xf32> to vector<16x1xf32>
    %cst_99 = arith.constant 3.200000e+01 : f32
    %212 = vector.broadcast %cst_99 : f32 to vector<16x1xf32>
    %213 = arith.divf %211, %212 : vector<16x1xf32>
    %214 = vector.broadcast %213 : vector<16x1xf32> to vector<16x32xf32>
    %215 = arith.subf %209, %214 : vector<16x32xf32>
    %216 = arith.mulf %215, %215 : vector<16x32xf32>
    %cst_100 = arith.constant dense<0.000000e+00> : vector<16xf32>
    %217 = vector.multi_reduction <add>, %216, %cst_100 [1] : vector<16x32xf32> to vector<16xf32>
    %218 = vector.shape_cast %217 : vector<16xf32> to vector<16x1xf32>
    %cst_101 = arith.constant 3.200000e+01 : f32
    %219 = vector.broadcast %cst_101 : f32 to vector<16x1xf32>
    %220 = arith.divf %218, %219 : vector<16x1xf32>
    %cst_102 = arith.constant 9.99999997E-7 : f32
    %221 = vector.broadcast %cst_102 : f32 to vector<16x1xf32>
    %222 = arith.addf %220, %221 : vector<16x1xf32>
    %223 = math.rsqrt %222 : vector<16x1xf32>
    %224 = vector.broadcast %223 : vector<16x1xf32> to vector<16x32xf32>
    %225 = arith.mulf %215, %224 : vector<16x32xf32>
    %c0_103 = arith.constant 0 : index
    %c0_104 = arith.constant 0 : index
    %226 = vector.load %arg12[%c0_103, %c0_104] : memref<32x128xbf16, #tpu.memory_space<vmem>>, vector<32x128xbf16>
    %c0_105 = arith.constant 0 : index
    %c0_106 = arith.constant 0 : index
    %227 = vector.load %arg13[%c0_105, %c0_106] : memref<1x128xf32, #tpu.memory_space<vmem>>, vector<1x128xf32>
    %228 = arith.truncf %225 : vector<16x32xf32> to vector<16x32xbf16>
    %cst_107 = arith.constant dense<0.000000e+00> : vector<16x128xf32>
    %229 = tpu.matmul %228, %226, %cst_107 {dimension_numbers = #tpu.dot_dimension_numbers<[1], [0], [0], [1], [0, 0, 1, 1], [], []>} : vector<16x32xbf16>, vector<32x128xbf16>, vector<16x128xf32> -> vector<16x128xf32>
    %230 = vector.broadcast %227 : vector<1x128xf32> to vector<16x128xf32>
    %231 = arith.addf %229, %230 : vector<16x128xf32>
    %c0_108 = arith.constant 0 : index
    %c0_109 = arith.constant 0 : index
    %232 = vector.load %arg16[%c0_108, %c0_109] : memref<16x128xf32, #tpu.memory_space<vmem>>, vector<16x128xf32>
    tpu.vector_store %arg16[%c0_108, %c0_109], %231 {strides = array<i32>} : memref<16x128xf32, #tpu.memory_space<vmem>>, vector<16x128xf32>,
    return
  }
  func.func @transform_0(%arg0: i32) -> (i32, i32) {
    %c0_i32 = arith.constant 0 : i32
    %c0_i32_0 = arith.constant 0 : i32
    return %arg0, %c0_i32 : i32, i32
  }
  func.func @transform_1(%arg0: i32) -> (i32, i32) {
    %c0_i32 = arith.constant 0 : i32
    %c0_i32_0 = arith.constant 0 : i32
    %c0_i32_1 = arith.constant 0 : i32
    return %c0_i32, %c0_i32_0 : i32, i32
  }
  func.func @transform_2(%arg0: i32) -> (i32, i32) {
    %c0_i32 = arith.constant 0 : i32
    %c0_i32_0 = arith.constant 0 : i32
    %c0_i32_1 = arith.constant 0 : i32
    return %c0_i32, %c0_i32_0 : i32, i32
  }
  func.func @transform_3(%arg0: i32) -> (i32, i32, i32) {
    %c0_i32 = arith.constant 0 : i32
    %c0_i32_0 = arith.constant 0 : i32
    %c0_i32_1 = arith.constant 0 : i32
    %c0_i32_2 = arith.constant 0 : i32
    return %c0_i32, %c0_i32_0, %c0_i32_1 : i32, i32, i32
  }
  func.func @transform_4(%arg0: i32) -> (i32, i32, i32) {
    %c0_i32 = arith.constant 0 : i32
    %c0_i32_0 = arith.constant 0 : i32
    %c0_i32_1 = arith.constant 0 : i32
    %c0_i32_2 = arith.constant 0 : i32
    return %c0_i32, %c0_i32_0, %c0_i32_1 : i32, i32, i32
  }
  func.func @transform_5(%arg0: i32) -> (i32, i32, i32) {
    %c0_i32 = arith.constant 0 : i32
    %c0_i32_0 = arith.constant 0 : i32
    %c0_i32_1 = arith.constant 0 : i32
    %c0_i32_2 = arith.constant 0 : i32
    return %c0_i32, %c0_i32_0, %c0_i32_1 : i32, i32, i32
  }
  func.func @transform_6(%arg0: i32) -> (i32, i32, i32) {
    %c0_i32 = arith.constant 0 : i32
    %c0_i32_0 = arith.constant 0 : i32
    %c0_i32_1 = arith.constant 0 : i32
    %c0_i32_2 = arith.constant 0 : i32
    return %c0_i32, %c0_i32_0, %c0_i32_1 : i32, i32, i32
  }
  func.func @transform_7(%arg0: i32) -> (i32, i32, i32) {
    %c0_i32 = arith.constant 0 : i32
    %c0_i32_0 = arith.constant 0 : i32
    %c0_i32_1 = arith.constant 0 : i32
    %c0_i32_2 = arith.constant 0 : i32
    return %c0_i32, %c0_i32_0, %c0_i32_1 : i32, i32, i32
  }
  func.func @transform_8(%arg0: i32) -> (i32, i32, i32) {
    %c0_i32 = arith.constant 0 : i32
    %c0_i32_0 = arith.constant 0 : i32
    %c0_i32_1 = arith.constant 0 : i32
    %c0_i32_2 = arith.constant 0 : i32
    return %c0_i32, %c0_i32_0, %c0_i32_1 : i32, i32, i32
  }
  func.func @transform_9(%arg0: i32) -> (i32, i32, i32) {
    %c0_i32 = arith.constant 0 : i32
    %c0_i32_0 = arith.constant 0 : i32
    %c0_i32_1 = arith.constant 0 : i32
    %c0_i32_2 = arith.constant 0 : i32
    return %c0_i32, %c0_i32_0, %c0_i32_1 : i32, i32, i32
  }
  func.func @transform_10(%arg0: i32) -> (i32, i32, i32) {
    %c0_i32 = arith.constant 0 : i32
    %c0_i32_0 = arith.constant 0 : i32
    %c0_i32_1 = arith.constant 0 : i32
    %c0_i32_2 = arith.constant 0 : i32
    return %c0_i32, %c0_i32_0, %c0_i32_1 : i32, i32, i32
  }
  func.func @transform_11(%arg0: i32) -> (i32, i32) {
    %c0_i32 = arith.constant 0 : i32
    %c0_i32_0 = arith.constant 0 : i32
    %c0_i32_1 = arith.constant 0 : i32
    return %c0_i32, %c0_i32_0 : i32, i32
  }
  func.func @transform_12(%arg0: i32) -> (i32, i32) {
    %c0_i32 = arith.constant 0 : i32
    %c0_i32_0 = arith.constant 0 : i32
    %c0_i32_1 = arith.constant 0 : i32
    return %c0_i32, %c0_i32_0 : i32, i32
  }
  func.func @transform_13(%arg0: i32) -> (i32, i32) {
    %c0_i32 = arith.constant 0 : i32
    %c0_i32_0 = arith.constant 0 : i32
    %c0_i32_1 = arith.constant 0 : i32
    return %c0_i32, %c0_i32_0 : i32, i32
  }
  func.func @transform_14(%arg0: i32) -> (i32, i32) {
    %c0_i32 = arith.constant 0 : i32
    %c0_i32_0 = arith.constant 0 : i32
    %c0_i32_1 = arith.constant 0 : i32
    return %c0_i32, %c0_i32_0 : i32, i32
  }
  func.func @transform_15(%arg0: i32) -> (i32, i32) {
    %c0_i32 = arith.constant 0 : i32
    %c0_i32_0 = arith.constant 0 : i32
    return %arg0, %c0_i32 : i32, i32
  }
}

</mosaic_0001>

<bundles_post_ra>
// kernel: vitpose_forward.1
= control target key start
LH: loop header
LB: loop body
LE: loop exit
PB: predicated region body
PF: predicated region fallthrough
CT: control target
= control target key end

     0   :  { %s4385_s0 = inlined_call_operand.vmem [shape: f32[32,192], index: 0, kind: input, shape index: {}]   ;;  %s4386_s1 = inlined_call_operand.vmem [shape: f32[16,32], index: 1, kind: input, shape index: {}]   ;;  %s4387_s2 = inlined_call_operand.vmem [shape: bf16[192,32], index: 2, kind: input, shape index: {}]   ;;  %s4388_s3 = inlined_call_operand.vmem [shape: bf16[2,32,96], index: 3, kind: input, shape index: {}]   ;;  %s4389_s4 = inlined_call_operand.vmem [shape: f32[2,1,96], index: 4, kind: input, shape index: {}]   ;;  %s4390_s5 = inlined_call_operand.vmem [shape: bf16[2,32,32], index: 5, kind: input, shape index: {}]   ;;  %s4391_s6 = inlined_call_operand.vmem [shape: f32[2,1,32], index: 6, kind: input, shape index: {}]   ;;  %s4392_s7 = inlined_call_operand.vmem [shape: bf16[2,32,128], index: 7, kind: input, shape index: {}]   ;;  %s4393_s8 = inlined_call_operand.vmem [shape: f32[2,1,128], index: 8, kind: input, shape index: {}]   ;;  %s4394_s9 = inlined_call_operand.vmem [shape: bf16[2,128,32], index: 9, kind: input, shape index: {}]   ;;  %s4395_s10 = inlined_call_operand.vmem [shape: f32[2,1,32], index: 10, kind: input, shape index: {}]   ;;  %s4396_s11 = inlined_call_operand.vmem [shape: bf16[32,128], index: 11, kind: input, shape index: {}]   ;;  %s4397_s12 = inlined_call_operand.vmem [shape: f32[1,128], index: 12, kind: input, shape index: {}]   ;;  %s4398_s13 = inlined_call_operand.vmem [shape: f32[64,32], index: 13, kind: input, shape index: {}]   ;;  %s4399_s14 = inlined_call_operand.vmem [shape: f32[64,64], index: 14, kind: input, shape index: {}]   ;;  %s4400_s15 = inlined_call_operand.hbm [shape: f32[32,128], index: 15, kind: output, shape index: {}]  }
   0x1   :  { %4406 = sst [smem:[#allocation8_spill]] %s4385_s0 }
   0x2   :  { %4407 = sst [smem:[#allocation9_spill]] %s4386_s1 }
   0x3   :  { %20 = vsyncpa [#allocation3], 0 }
   0x4   :  { %22 = vsyncpa [#allocation3 + $0x1], 0  ;;  %s3536_s18 = smov 0   ;;  %s3538_s19 = smov 0  }
   0x5   :  { %s3540_s20 = smov 0   ;;  %s3542_s21 = smov 0  }
   0x6 LB: > { %4408 = sst [smem:[#allocation5_spill]] %s3441_s20  ;;  %s3557_s22 = sadd.s32 4294967295, %s3445_s21   ;;  %s3445_s21 = sphi %s3542_s21, %s4418_s21   ;;  %s3441_s20 = sphi %s3540_s20, %s4420_s20   ;;  %s3437_s19 = sphi %s3538_s19, %s4422_s19   ;;  %s3433_s18 = sphi %s3536_s18, %s4421_s18  }
   0x7   : > { %s2565_s23 = sadd.s32 4294967294, %s3445_s21   ;;  %s3561_s24 = sadd.s32 1, %s3445_s21  }
   0x8   : > { %4409 = sst [smem:[#allocation6_spill]] %s3561_s24  ;;  %s355_s25 = sadd.s32 1, %s3441_s20 }
   0x9   : > { %s352_s26 = ssub.s32 %s3445_s21, %s3561_s24  ;;  %p365_p0 = scmp.ne.s32.totalorder %s3441_s20, %s3437_s19 }
   0xa   : > { %p353_p1 = scmp.eq.s32.totalorder %s352_s26, 0  ;;  %p366_p2 = scmp.eq.s32.totalorder %s3557_s22, 1 }
   0xb   : > { %p371_p3 = scmp.ne.s32.totalorder %s3437_s19, %s3433_s18  ;;  %p372_p4 = scmp.eq.s32.totalorder %s2565_s23, 1 }
   0xc   : > { %s3572_s27 = scalar_select %p353_p1, %s3441_s20, %s355_s25  }
   0xd   : > { %p3574_p5 = por %p366_p2, %p365_p0  ;;  %p3578_p6 = por %p372_p4, %p371_p3 }
   0xe   : > { %4410 = sst [smem:[#allocation7_spill]] %s3572_s27  ;;  %p2568_p7 = scmp.ge.s32.totalorder %s3445_s21, 1 }
   0xf   : > { %p442_p8 = scmp.lt.s32.totalorder %s3445_s21, 3 }
  0x11   : > { %p443_p9 = pnand %p2568_p7, %p442_p8 }
  0x12   : > { %v3249_v0 = vld [vmem:[%s4387_s2] sm:$0xff] (!%p443_p9)   ;;  %v3447_v1 = vmov (!%p443_p9), 0   ;;  %s2570_s17 = sshll.u32 (!%p443_p9), %s3557_s22, 1  ;;  %v3250_v2 = vld [vmem:[%s4387_s2 + $0x8] sm:$0xff] (!%p443_p9)   ;;  %v3251_v3 = vld [vmem:[%s4387_s2 + $0x10] sm:$0xff] (!%p443_p9)   ;;  %s4413_s0 = sld [smem:[#allocation8_spill]] (!%p443_p9) }
  0x13   : > { %446 = sbr.rel (%p443_p9) target bundleno = 5775 (0x168f), region = 80  ;;  %608 = vmatprep.subr.bf16.mxu0 (!%p443_p9), %v3447_v1  ;;  %p492_p10 = scmp.lt.s32.totalorder (!%p443_p9), %s2570_s17, 3  ;;  %v3252_v4 = vld [vmem:[%s4387_s2 + $0x18] sm:$0xff] (!%p443_p9)   ;;  %vm604_vm0 = vcmask (!%p443_p9), 523264   ;;  %v3253_v7 = vld [vmem:[%s4387_s2 + $0x20] sm:$0xff] (!%p443_p9)   ;;  %v3254_v9 = vld [vmem:[%s4387_s2 + $0x28] sm:$0xff] (!%p443_p9)  }
  0x14   : > { %609 = vmatpush1.bf16.msra.mxu0 (!%p443_p9), %v3249_v0  ;;  %v3255_v10 = vld [vmem:[%s4387_s2 + $0x30] sm:$0xff] (!%p443_p9)   ;;  %v3256_v11 = vld [vmem:[%s4387_s2 + $0x38] sm:$0xff] (!%p443_p9)   ;;  %v3257_v12 = vld [vmem:[%s4387_s2 + $0x40] sm:$0xff] (!%p443_p9)   ;;  %s4414_s1 = sld [smem:[#allocation9_spill]] (!%p443_p9)  ;;  %vm665_vm1 = vcmask (!%p443_p9), 261120   ;;  %v3448_v40 = vmov (!%p443_p9), 0.0  }
  0x15   : > { %610 = vmatprep.subr.bf16.mxu0 (!%p443_p9), %v3447_v1  ;;  %v3258_v13 = vld [vmem:[%s4387_s2 + $0x48] sm:$0xff] (!%p443_p9)   ;;  %v3259_v14 = vld [vmem:[%s4387_s2 + $0x50] sm:$0xff] (!%p443_p9)   ;;  %v3260_v15 = vld [vmem:[%s4387_s2 + $0x58] sm:$0xff] (!%p443_p9)   ;;  %2822 = vmatprep.subr.bf16.mxu1 (!%p443_p9), %v3448_v40  ;;  %vm3449_vm2 = vmmov (!%p443_p9), 0   ;;  %s3451_s27 = smov (!%p443_p9), 96   ;;  %s4404_s26 = smov (!%p443_p9), 64  }
  0x16   : > { %v3261_v39 = vld [vmem:[%s4388_s3] sm:$0xff] (!%p443_p9)   ;;  %2826 = vmatprep.mubr.msk.bf16.mxu1 (!%p443_p9), %vm3449_vm2, %v3448_v40  ;;  %v3262_v41 = vld [vmem:[%s4388_s3 + $0x8] sm:$0xff] (!%p443_p9)   ;;  %v3677_v44 = vld [vmem:[%s4398_s13 + $0x10] sm:$0xff] (!%p443_p9)  ;;  %s2718_s30 = sshll.u32 (!%p443_p9), %s3557_s22, 8 }
  0x17   : > { %2823 = vmatpush3.bf16.msra.mxu1 (!%p443_p9), %v3261_v39  ;;  %v3665_v42 = vld [vmem:[%s4398_s13 + $0x8] sm:$0xff] (!%p443_p9)  ;;  %v3670_v43 = vld [vmem:[%s4398_s13] sm:$0xff] (!%p443_p9)  ;;  %v3689_v46 = vld [vmem:[%s4398_s13 + $0x18] sm:$0xff] (!%p443_p9)  ;;  %s4342_s25 = scalar_lea.hbm (!%p443_p9), %s4400_s15, %s2718_s30 }
  0x18   : > { %611 = vmatpush1.bf16.msra.mxu0 (!%p443_p9), %v3250_v2  ;;  %2824 = vmatprep.subr.bf16.mxu1 (!%p443_p9), %v3448_v40  ;;  %v3682_v45 = vld [vmem:[%s4398_s13 + $0x20] sm:$0xff] (!%p443_p9)  ;;  %v3694_v47 = vld [vmem:[%s4398_s13 + $0x30] sm:$0xff] (!%p443_p9)  ;;  %v3701_v48 = vld [vmem:[%s4398_s13 + $0x28] sm:$0xff] (!%p443_p9) }
  0x19   : > { %612 = vmatprep.subr.bf16.mxu0 (!%p443_p9), %v3447_v1  ;;  %v3707_v49 = vld [vmem:[%s4398_s13 + $0x38] sm:$0xff] (!%p443_p9)  ;;  %vm3775_vm3 = vmpackc.low (!%p443_p9), %vm665_vm1, %vm665_vm1 }
  0x1a   : > { %s4424_s17 = smov (!%p492_p10, %s2570_s17), 3  ;;  %v530_v19 = vld [vmem:[%s4414_s1] sm:$0xff]  ;;  %v531_v21 = vld [vmem:[%s4414_s1 + $0x8] sm:$0xff] }
  0x1b   : > { %s2717_s20 = sshll.u32 %s4424_s17, 4  ;;  %2825 = vmatpush3.bf16.msra.mxu1 %v3262_v41  ;;  %s3450_s17 = smov 32  }
  0x1c   : > { %s3597_s24 = scalar_lea.vmem %s4413_s0, %s2717_s20  ;;  %613 = vmatpush1.bf16.msra.mxu0 %v3251_v3  ;;  %s3453_s20 = smov [#allocation2]  }
  0x1d   : > { %614 = vmatprep.subr.bf16.mxu0 %v3447_v1  ;;  %v501_v5 = vld [vmem:[%s3597_s24 + $0x8] sm:$0xff]  ;;  %v503_v6 = vld [vmem:[%s3597_s24 + $0x18] sm:$0xff]  ;;  %v500_v16 = vld [vmem:[%s3597_s24] sm:$0xff]  ;;  %s3387_s0 = sshll.u32 %s3453_s20, 4  ;;  %s3388_s0 = int_to_ptr.vmem [resolvable:$false] %s3387_s0 }
  0x1e   : > { %v529_v8 = vpack.c.bf16 %v503_v6, %v501_v5  ;;  %v502_v17 = vld [vmem:[%s3597_s24 + $0x10] sm:$0xff]  ;;  %s3389_s1 = scalar_lea.vmem %s3388_s0, 512 }
  0x1f   : > { %v528_v18 = vpack.c.bf16 %v502_v17, %v500_v16 }
  0x20   : > { %615 = vmatpush1.bf16.msra.mxu0 %v3252_v4  ;;  %2585 = vmatprep.mubr.msk.bf16.mxu0 %vm604_vm0, %v529_v8 }
  0x21   : > { %616 = vmatprep.subr.bf16.mxu0 %v3447_v1 }
  0x24   : > { %617 = vmatpush1.bf16.msra.mxu0 %v3253_v7 }
  0x25   : > { %618 = vmatprep.subr.bf16.mxu0 %v3447_v1 }
  0x28   : > { %619 = vmatpush1.bf16.msra.mxu0 %v3254_v9 }
  0x29   : > { %620 = vmatprep.subr.bf16.mxu0 %v3447_v1 }
  0x2c   : > { %621 = vmatpush1.bf16.msra.mxu0 %v3255_v10 }
  0x2d   : > { %622 = vmatprep.subr.bf16.mxu0 %v3447_v1 }
  0x30   : > { %623 = vmatpush1.bf16.msra.mxu0 %v3256_v11 }
  0x31   : > { %624 = vmatprep.subr.bf16.mxu0 %v3447_v1 }
  0x34   : > { %625 = vmatpush1.bf16.msra.mxu0 %v3257_v12 }
  0x35   : > { %626 = vmatprep.subr.bf16.mxu0 %v3447_v1 }
  0x38   : > { %627 = vmatpush1.bf16.msra.mxu0 %v3258_v13 }
  0x39   : > { %628 = vmatprep.subr.bf16.mxu0 %v3447_v1 }
  0x3c   : > { %629 = vmatpush1.bf16.msra.mxu0 %v3259_v14 }
  0x3d   : > { %630 = vmatprep.subr.bf16.mxu0 %v3447_v1  ;;  %v2586_v1 = vld [vmem:[%s4389_s4] ss:$0 sm:$0xff] }
  0x40   : > { %631 = vmatpush1.bf16.msra.mxu0 %v3260_v15 }
  0x41   : > { %2886 = vmatprep.subr.bf16.mxu0 %v3448_v40 }
  0x43   : > { %641 = vmatmul.mubr.bf16.vlgmr.msra.gmra.mrb[0].mxu0 %v528_v18 }
  0x44   : > { %2890 = vmatprep.mubr.msk.bf16.mxu0 %vm3449_vm2, %v3448_v40 }
 0x116   : > { %v642_v20 = vpop.f32.mrb[0].mxu0 }
 0x117   : > { %v3637_v22 = vadd.f32 %v642_v20, %v530_v19  ;;  %v644_v23 = vpop.f32.mrb[1].mxu0 }
 0x118   : > { %v645_v24 = vpop.f32.mrb[2].mxu0 }
 0x119   : > { %v3639_v25 = vadd.f32 %v645_v24, %v531_v21  ;;  %v647_v26 = vpop.f32.mrb[3].mxu0  ;;  %v666_v27 = vsel %vm665_vm1, %v3637_v22, 0.0 }
 0x11a   : > { %667 = vadd.xlane.f32.xlu0 %v666_v27 }
 0x11b   : > { %v669_v28 = vsel %vm665_vm1, %v3639_v25, 0.0 }
 0x11e   : > { %670 = vadd.xlane.f32.xlu0 %v669_v28 }
 0x134   : > { %777 = vrot.lane.b32.xlu0 %v3670_v43, %s3450_s17 }
 0x138   : > { %785 = vrot.lane.b32.xlu0 %v3682_v45, %s3450_s17 }
 0x13c   : > { %789 = vrot.lane.b32.xlu0 %v3694_v47, %s3450_s17 }
 0x1a7   : > { %v668_v29 = vpop.xlane.xlu0 %667 }
 0x1a8   : > { %v673_v30 = vmul.f32 0.03125, %v668_v29 }
 0x1aa   : > { %v675_v31 = vsub.f32 %v3637_v22, %v673_v30 }
 0x1ab   : > { %v671_v32 = vpop.xlane.xlu0 %670 }
 0x1ac   : > { %v674_v33 = vmul.f32 0.03125, %v671_v32  ;;  %v677_v34 = vmul.f32 %v675_v31, %v675_v31 }
 0x1ae   : > { %v676_v35 = vsub.f32 %v3639_v25, %v674_v33  ;;  %v679_v36 = vsel %vm665_vm1, %v677_v34, 0.0 }
 0x1af   : > { %680 = vadd.xlane.f32.xlu1 %v679_v36  ;;  %v3717_v0 = vpop.permute.xlu0 %777 }
 0x1b0   : > { %v678_v37 = vmul.f32 %v676_v35, %v676_v35 }
 0x1b2   : > { %v682_v38 = vsel %vm665_vm1, %v678_v37, 0.0 }
 0x1b3   : > { %683 = vadd.xlane.f32.xlu1 %v682_v38  ;;  %v3724_v3 = vpop.permute.xlu0 %785 }
 0x1b7   : > { %v3743_v16 = vpop.permute.xlu0 %789 }
 0x1c4   : > { %779 = vrot.lane.b32.xlu1 %v3665_v42, %s3450_s17 }
 0x1c8   : > { %781 = vrot.lane.b32.xlu1 %v3677_v44, %s3450_s17 }
 0x1cc   : > { %783 = vrot.lane.b32.xlu1 %v3689_v46, %s3450_s17 }
 0x1d0   : > { %787 = vrot.lane.b32.xlu1 %v3701_v48, %s3450_s17 }
 0x1d4   : > { %791 = vrot.lane.b32.xlu1 %v3707_v49, %s3450_s17  ;;  %s488_s17 = sand.u32 1, %s3437_s19  }
 0x23c   : > { %v681_v50 = vpop.xlane.xlu1 %680 }
 0x23d   : > { %v685_v51 = vmul.f32 0.03125, %v681_v50 }
 0x23f   : > { %v687_v52 = vadd.f32 1e-06, %v685_v51 }
 0x240   : > { %v684_v53 = vpop.xlane.xlu1 %683 }
 0x241   : > { %v686_v54 = vmul.f32 0.03125, %v684_v53  ;;  %3291 = vrsqrt.f32 %v687_v52 }
 0x243   : > { %v688_v55 = vadd.f32 1e-06, %v686_v54 }
 0x244   : > { %v3711_v61 = vpop.permute.xlu1 %779 }
 0x245   : > { %3293 = vrsqrt.f32 %v688_v55 }
 0x248   : > { %v3713_v62 = vpop.permute.xlu1 %781 }
 0x24b   : > { %v3292_v56 = vpop.eup %3291 }
 0x24c   : > { %v691_v58 = vmul.f32 %v3292_v56, %v675_v31  ;;  %v3715_v63 = vpop.permute.xlu1 %783 }
 0x24f   : > { %v3294_v57 = vpop.eup %3293 }
 0x250   : > { %v692_v59 = vmul.f32 %v3294_v57, %v676_v35  ;;  %v3722_v2 = vpop.permute.xlu1 %787 }
 0x252   : > { %v698_v60 = vpack.c.bf16 %v692_v59, %v691_v58 }
 0x254   : > { %2827 = vmatmul.mubr.msk.bf16.vlgmr.msra.gmra.mrb[0].mxu1 %vm665_vm1, %v698_v60  ;;  %v3732_v11 = vpop.permute.xlu1 %791  ;;  %v3819_v60 = vld [vmem:[%s4399_s14 + $0x8] sm:$0xff] }
 0x327   : > { %v754_v4 = vpop.f32.mrb[0].mxu1 }
 0x328   : > { %v3726_v5 = vadd.f32 %v2586_v1, %v754_v4  ;;  %v2828_v6 = vpop.f32.mrb[1].mxu1 }
 0x329   : > { %v757_v7 = vpop.f32.mrb[2].mxu1 }
 0x32a   : > { %v3728_v8 = vadd.f32 %v2586_v1, %v757_v7  ;;  %v2829_v9 = vpop.f32.mrb[3].mxu1  ;;  %v761_v10 = vmul.f32 %v3726_v5, %v3670_v43  ;;  %v803_v12 = vmul.f32 %v3713_v62, %v3726_v5  ;;  %v801_v14 = vmul.f32 %v3717_v0, %v3726_v5  ;;  %v3824_v1 = vld [vmem:[%s4399_s14] sm:$0xff] }
 0x32b   : > { %v807_v21 = vmul.f32 %v3743_v16, %v3726_v5  ;;  %v805_v23 = vmul.f32 %v3724_v3, %v3726_v5  ;;  %v763_v54 = vmul.f32 %v3726_v5, %v3677_v44  ;;  %v765_v56 = vmul.f32 %v3726_v5, %v3682_v45 }
 0x32c   : > { %2846 = vmatprep.mubr.msk.f32.mxu1 %vm665_vm1, %v761_v10  ;;  %v804_v13 = vmul.f32 %v3715_v63, %v3728_v8  ;;  %v802_v15 = vmul.f32 %v3711_v61, %v3728_v8  ;;  %v808_v17 = vmul.f32 %v3732_v11, %v3728_v8  ;;  %v806_v20 = vmul.f32 %v3722_v2, %v3728_v8  ;;  %v3831_v10 = vld [vmem:[%s4399_s14 + $0x18] sm:$0xff] }
 0x32d   : > { %v762_v53 = vmul.f32 %v3728_v8, %v3665_v42  ;;  %v764_v55 = vmul.f32 %v3728_v8, %v3689_v46  ;;  %v766_v57 = vmul.f32 %v3728_v8, %v3701_v48  ;;  %v767_v58 = vmul.f32 %v3726_v5, %v3694_v47 }
 0x32e   : > { %v3174_v18 = vpack.i.bf16 %v804_v13, %v803_v12  ;;  %v3169_v19 = vpack.i.bf16 %v802_v15, %v801_v14  ;;  %v3184_v24 = vpack.i.bf16 %v808_v17, %v807_v21  ;;  %v3179_v26 = vpack.i.bf16 %v806_v20, %v805_v23 }
 0x32f   : > { %v768_v59 = vmul.f32 %v3728_v8, %v3707_v49 }
 0x330   : > { %3175 = vrot.lane.b32.xlu1 %v3174_v18, %s3451_s27  ;;  %3170 = vrot.lane.b32.xlu0 %v3169_v19, %s3451_s27  ;;  %v3839_v18 = vld [vmem:[%s4399_s14 + $0x10] sm:$0xff]  ;;  %v3844_v19 = vld [vmem:[%s4399_s14 + $0x28] sm:$0xff] }
 0x334   : > { %3180 = vrot.lane.b32.xlu0 %v3179_v26, %s3451_s27  ;;  %3185 = vrot.lane.b32.xlu1 %v3184_v24, %s3451_s27 }
 0x338   : > { %809 = vrot.lane.b32.xlu0 %v3670_v43, %s4404_s26  ;;  %811 = vrot.lane.b32.xlu1 %v3665_v42, %s4404_s26 }
 0x33c   : > { %817 = vrot.lane.b32.xlu0 %v3682_v45, %s4404_s26  ;;  %813 = vrot.lane.b32.xlu1 %v3677_v44, %s4404_s26 }
 0x340   : > { %821 = vrot.lane.b32.xlu0 %v3694_v47, %s4404_s26  ;;  %815 = vrot.lane.b32.xlu1 %v3689_v46, %s4404_s26 }
 0x344   : > { %819 = vrot.lane.b32.xlu1 %v3701_v48, %s4404_s26 }
 0x348   : > { %823 = vrot.lane.b32.xlu1 %v3707_v49, %s4404_s26 }
 0x3a2   : > { %v3176_v27 = vpop.permute.xlu1 %3175  ;;  %v3171_v28 = vpop.permute.xlu0 %3170 }
 0x3a3   : > { %v3178_v29 = vunpack.i.h.bf16 %v3176_v27  ;;  %v3177_v30 = vunpack.i.l.bf16 %v3176_v27  ;;  %v3173_v31 = vunpack.i.h.bf16 %v3171_v28  ;;  %v3172_v32 = vunpack.i.l.bf16 %v3171_v28  ;;  %v3852_v27 = vld [vmem:[%s4399_s14 + $0x20] sm:$0xff]  ;;  %v3857_v28 = vld [vmem:[%s4399_s14 + $0x38] sm:$0xff] }
 0x3a5   : > { %v3030_v34 = vpack.c.bf16 %v3173_v31, %v3172_v32  ;;  %v3036_v35 = vpack.c.bf16 %v3178_v29, %v3177_v30 }
 0x3a6   : > { %v3181_v36 = vpop.permute.xlu0 %3180  ;;  %v3186_v41 = vpop.permute.xlu1 %3185 }
 0x3a7   : > { %3032 = vmatprep.subr.msk.bf16.mxu1 %vm3775_vm3, %v3030_v34  ;;  %v3183_v37 = vunpack.i.h.bf16 %v3181_v36  ;;  %v3182_v38 = vunpack.i.l.bf16 %v3181_v36  ;;  %v3188_v50 = vunpack.i.h.bf16 %v3186_v41  ;;  %v3187_v51 = vunpack.i.l.bf16 %v3186_v41 }
 0x3a8   : > { %3035 = vmatpush3.bf16.xpose.msk.msra.mxu1 %vm3775_vm3, %v3030_v34 }
 0x3a9   : > { %3038 = vmatprep.subr.msk.bf16.mxu1 %vm3775_vm3, %v3036_v35  ;;  %v3042_v39 = vpack.c.bf16 %v3183_v37, %v3182_v38  ;;  %v3048_v52 = vpack.c.bf16 %v3188_v50, %v3187_v51  ;;  %v3870_v37 = vld [vmem:[%s4399_s14 + $0x30] sm:$0xff] }
 0x3aa   : > { %v3860_v30 = vpop.permute.xlu1 %811 }
 0x3ae   : > { %v3878_v50 = vpop.permute.xlu1 %813 }
 0x3b0   : > { %3041 = vmatpush3.bf16.xpose.msk.msra.mxu1 %vm3775_vm3, %v3036_v35 }
 0x3b1   : > { %3044 = vmatprep.subr.msk.bf16.mxu1 %vm3775_vm3, %v3042_v39 }
 0x3b8   : > { %3047 = vmatpush3.bf16.xpose.msk.msra.mxu1 %vm3775_vm3, %v3042_v39 }
 0x3b9   : > { %3050 = vmatprep.subr.msk.bf16.mxu1 %vm3775_vm3, %v3048_v52 }
 0x3c0   : > { %3053 = vmatpush3.bf16.xpose.msk.msra.mxu1 %vm3775_vm3, %v3048_v52  ;;  %v3882_v52 = vpop.permute.xlu1 %815 }
 0x3c7   : > { %2847 = vmatmul.mubr.msk.f32.vlgmr.msra.gmra.mrb[4].mxu1 %vm665_vm1, %v762_v53  ;;  %v836_v53 = vmul.f32 %v3882_v52, %v3728_v8 }
 0x3c8   : > { %2849 = vmatprep.mubr.msk.f32.mxu1 %vm665_vm1, %v763_v54  ;;  %v835_v54 = vmul.f32 %v3878_v50, %v3726_v5 }
 0x3cb   : > { %2850 = vmatmul.mubr.msk.f32.gmra.mrb[6].mxu1 %vm665_vm1, %v764_v55  ;;  %v3194_v55 = vpack.i.bf16 %v836_v53, %v835_v54 }
 0x3cc   : > { %2852 = vmatprep.mubr.msk.f32.mxu1 %vm665_vm1, %v765_v56  ;;  %v3889_v56 = vpop.permute.xlu0 %809 }
 0x3cf   : > { %2853 = vmatmul.mubr.msk.f32.gmra.mrb[8].mxu1 %vm665_vm1, %v766_v57  ;;  %v834_v57 = vmul.f32 %v3860_v30, %v3728_v8 }
 0x3d0   : > { %2855 = vmatprep.mubr.msk.f32.mxu1 %vm665_vm1, %v767_v58  ;;  %v833_v58 = vmul.f32 %v3889_v56, %v3726_v5 }
 0x3d3   : > { %2856 = vmatmul.mubr.msk.f32.gmra.mrb[10].mxu1 %vm665_vm1, %v768_v59  ;;  %v3189_v59 = vpack.i.bf16 %v834_v57, %v833_v58 }
 0x49a   : > { %v2848_v4 = vpop.f32.mrb[4].mxu1 }
 0x49b   : > { %v977_v6 = vadd.f32 %v2848_v4, %v3819_v60  ;;  %v971_v7 = vpop.f32.mrb[5].mxu1  ;;  %v3896_v4 = vpop.permute.xlu1 %819 }
 0x49c   : > { %v972_v9 = vadd.f32 %v971_v7, %v3824_v1  ;;  %v3898_v7 = vpop.permute.xlu0 %817 }
 0x49d   : > { %v1013_v12 = vsel %vm604_vm0, %v977_v6, -inf }
 0x49e   : > { %1014 = vmax.xlane.f32.xlu1 %v1013_v12  ;;  %v2851_v13 = vpop.f32.mrb[6].mxu1  ;;  %v1010_v14 = vsel %vm604_vm0, %v972_v9, -inf }
 0x49f   : > { %v987_v15 = vadd.f32 %v2851_v13, %v3831_v10  ;;  %v981_v17 = vpop.f32.mrb[7].mxu1  ;;  %1011 = vmax.xlane.f32.xlu0 %v1010_v14  ;;  %v3900_v12 = vpop.permute.xlu1 %823 }
 0x4a0   : > { %v982_v21 = vadd.f32 %v981_v17, %v3839_v18  ;;  %v3902_v13 = vpop.permute.xlu0 %821 }
 0x4a1   : > { %v1019_v20 = vsel %vm604_vm0, %v987_v15, -inf }
 0x4a2   : > { %v2854_v23 = vpop.f32.mrb[8].mxu1  ;;  %v1016_v34 = vsel %vm604_vm0, %v982_v21, -inf }
 0x4a3   : > { %v997_v24 = vadd.f32 %v2854_v23, %v3844_v19  ;;  %v991_v26 = vpop.f32.mrb[9].mxu1  ;;  %1020 = vmax.xlane.f32.xlu0 %v1019_v20 }
 0x4a4   : > { %v992_v31 = vadd.f32 %v991_v26, %v3852_v27 }
 0x4a5   : > { %v1025_v29 = vsel %vm604_vm0, %v997_v24, -inf }
 0x4a6   : > { %1026 = vmax.xlane.f32.xlu1 %v1025_v29  ;;  %v2857_v32 = vpop.f32.mrb[10].mxu1  ;;  %v1022_v41 = vsel %vm604_vm0, %v992_v31, -inf }
 0x4a7   : > { %v3865_v35 = vadd.f32 %v2857_v32, %v3857_v28  ;;  %v1001_v36 = vpop.f32.mrb[11].mxu1  ;;  %1017 = vmax.xlane.f32.xlu0 %v1016_v34 }
 0x4a8   : > { %v3875_v39 = vadd.f32 %v1001_v36, %v3870_v37 }
 0x4a9   : > { %v1031_v38 = vsel %vm604_vm0, %v3865_v35, -inf }
 0x4aa   : > { %1032 = vmax.xlane.f32.xlu1 %v1031_v38  ;;  %v1028_v51 = vsel %vm604_vm0, %v3875_v39, -inf }
 0x4ab   : > { %1023 = vmax.xlane.f32.xlu0 %v1022_v41 }
 0x4af   : > { %1029 = vmax.xlane.f32.xlu0 %v1028_v51 }
 0x4bb   : > { %3195 = vrot.lane.b32.xlu1 %v3194_v55, %s4404_s26 }
 0x4c5   : > { %3190 = vrot.lane.b32.xlu0 %v3189_v59, %s4404_s26 }
 0x52b   : > { %v1015_v14 = vpop.xlane.xlu1 %1014 }
 0x52c   : > { %v1035_v17 = vsub.f32 %v977_v6, %v1015_v14  ;;  %v1012_v20 = vpop.xlane.xlu0 %1011 }
 0x52d   : > { %v1034_v23 = vsub.f32 %v972_v9, %v1012_v20 }
 0x52e   : > { %v1044_v26 = vmul.f32 1.442695, %v1035_v17 }
 0x52f   : > { %v1042_v29 = vmul.f32 1.442695, %v1034_v23 }
 0x530   : > { %3295 = vpow2.f32 %v1044_v26  ;;  %v1021_v32 = vpop.xlane.xlu0 %1020 }
 0x531   : > { %3297 = vpow2.f32 %v1042_v29  ;;  %v1037_v34 = vsub.f32 %v987_v15, %v1021_v32 }
 0x533   : > { %v1048_v36 = vmul.f32 1.442695, %v1037_v34  ;;  %v1027_v38 = vpop.xlane.xlu1 %1026 }
 0x534   : > { %v1039_v41 = vsub.f32 %v997_v24, %v1027_v38  ;;  %v1018_v51 = vpop.xlane.xlu0 %1017 }
 0x535   : > { %3299 = vpow2.f32 %v1048_v36  ;;  %v1036_v53 = vsub.f32 %v982_v21, %v1018_v51 }
 0x536   : > { %v1052_v54 = vmul.f32 1.442695, %v1039_v41 }
 0x537   : > { %v1046_v55 = vmul.f32 1.442695, %v1036_v53  ;;  %v1033_v57 = vpop.xlane.xlu1 %1032 }
 0x538   : > { %v1024_v58 = vpop.xlane.xlu0 %1023 }
 0x539   : > { %3301 = vpow2.f32 %v1046_v55  ;;  %v1038_v6 = vsub.f32 %v992_v31, %v1024_v58 }
 0x53a   : > { %v3904_v59 = vpop.eup %3295  ;;  %3303 = vpow2.f32 %v1052_v54 }
 0x53b   : > { %v3906_v9 = vpop.eup %3297  ;;  %v1050_v14 = vmul.f32 1.442695, %v1038_v6  ;;  %v1061_v15 = vsel %vm604_vm0, %v3904_v59, 0.0  ;;  %v3196_v17 = vpop.permute.xlu1 %3195  ;;  %v840_v6 = vmul.f32 %v3900_v12, %v3728_v8 }
 0x53c   : > { %1062 = vadd.xlane.f32.xlu1 %v1061_v15  ;;  %v1030_v24 = vpop.xlane.xlu0 %1029  ;;  %v1058_v21 = vsel %vm604_vm0, %v3906_v9, 0.0  ;;  %v3198_v26 = vunpack.i.h.bf16 %v3196_v17  ;;  %v3197_v29 = vunpack.i.l.bf16 %v3196_v17  ;;  %v837_v17 = vmul.f32 %v3898_v7, %v3726_v5 }
 0x53d   : > { %3305 = vpow2.f32 %v1050_v14  ;;  %1059 = vadd.xlane.f32.xlu0 %v1058_v21  ;;  %v839_v14 = vmul.f32 %v3902_v13, %v3726_v5  ;;  %v838_v21 = vmul.f32 %v3896_v4, %v3728_v8  ;;  %v3263_v5 = vld [vmem:[%s4390_s5] sm:$0xff]  }
 0x53e   : > { %v3058_v53 = vpack.c.bf16 %v3198_v26, %v3197_v29  ;;  %v1040_v26 = vsub.f32 %v3875_v39, %v1030_v24  ;;  %2887 = vmatpush3.bf16.msra.mxu0 %v3263_v5 }
 0x53f   : > { %v3912_v20 = vpop.eup %3299  ;;  %v3204_v15 = vpack.i.bf16 %v840_v6, %v839_v14  ;;  %2888 = vmatprep.subr.bf16.mxu0 %v3448_v40 }
 0x540   : > { %v3191_v31 = vpop.permute.xlu0 %3190  ;;  %v1067_v23 = vsel %vm604_vm0, %v3912_v20, 0.0 }
 0x541   : > { %v3193_v32 = vunpack.i.h.bf16 %v3191_v31  ;;  %v3192_v34 = vunpack.i.l.bf16 %v3191_v31  ;;  %1068 = vadd.xlane.f32.xlu0 %v1067_v23  ;;  %v3199_v31 = vpack.i.bf16 %v838_v21, %v837_v17  ;;  %v1041_v23 = vsub.f32 %v3865_v35, %v1033_v57 }
 0x543   : > { %v3916_v36 = vpop.eup %3301  ;;  %v3054_v38 = vpack.c.bf16 %v3193_v32, %v3192_v34  ;;  %v1056_v29 = vmul.f32 1.442695, %v1041_v23  ;;  %v1054_v32 = vmul.f32 1.442695, %v1040_v26 }
 0x544   : > { %v1064_v41 = vsel %vm604_vm0, %v3916_v36, 0.0  ;;  %v3920_v51 = vpop.eup %3303 }
 0x545   : > { %1065 = vadd.xlane.f32.xlu0 %v1064_v41  ;;  %3055 = vmatprep.subr.bf16.mxu1 %v3054_v38  ;;  %v1073_v55 = vsel %vm604_vm0, %v3920_v51, 0.0  ;;  %3307 = vpow2.f32 %v1056_v29 }
 0x546   : > { %3057 = vmatpush3.bf16.msra.mxu1 %v3054_v38  ;;  %3309 = vpow2.f32 %v1054_v32 }
 0x547   : > { %v3922_v54 = vpop.eup %3305  ;;  %3059 = vmatprep.subr.bf16.mxu1 %v3058_v53 }
 0x548   : > { %v1070_v58 = vsel %vm604_vm0, %v3922_v54, 0.0 }
 0x549   : > { %1074 = vadd.xlane.f32.xlu0 %v1073_v55  ;;  %1071 = vadd.xlane.f32.xlu1 %v1070_v58 }
 0x54a   : > { %3061 = vmatpush3.bf16.msra.mxu1 %v3058_v53 }
 0x54f   : > { %v3308_v34 = vpop.eup %3307 }
 0x550   : > { %v3310_v38 = vpop.eup %3309  ;;  %v1079_v8 = vsel %vm604_vm0, %v3308_v34, 0.0 }
 0x551   : > { %v1076_v41 = vsel %vm604_vm0, %v3310_v38, 0.0 }
 0x55a   : > { %3205 = vrot.lane.b32.xlu1 %v3204_v15, %s4404_s26 }
 0x55f   : > { %3200 = vrot.lane.b32.xlu0 %v3199_v31, %s4404_s26 }
 0x57e   : > { %1080 = vadd.xlane.f32.xlu0 %v1079_v8  ;;  %1077 = vadd.xlane.f32.xlu1 %v1076_v41 }
 0x5c9   : > { %v1063_v57 = vpop.xlane.xlu1 %1062 }
 0x5ca   : > { %v1060_v35 = vpop.xlane.xlu0 %1059 }
 0x5cb   : > { %3311 = vrcp.f32 %v1060_v35 }
 0x5cc   : > { %3313 = vrcp.f32 %v1063_v57 }
 0x5ce   : > { %v1069_v39 = vpop.xlane.xlu0 %1068 }
 0x5d2   : > { %v1066_v24 = vpop.xlane.xlu0 %1065 }
 0x5d3   : > { %3315 = vrcp.f32 %v1066_v24 }
 0x5d4   : > { %3317 = vrcp.f32 %v1069_v39 }
 0x5d5   : > { %v3312_v53 = vpop.eup %3311 }
 0x5d6   : > { %v1072_v55 = vpop.xlane.xlu1 %1071  ;;  %v1075_v58 = vpop.xlane.xlu0 %1074  ;;  %v1090_v6 = vmul.f32 %v3312_v53, %v3906_v9 }
 0x5d7   : > { %3319 = vrcp.f32 %v1072_v55  ;;  %v3314_v32 = vpop.eup %3313 }
 0x5d8   : > { %2874 = vmatprep.mubr.msk.f32.mxu1 %vm604_vm0, %v1090_v6  ;;  %v1091_v9 = vmul.f32 %v3314_v32, %v3904_v59  ;;  %3321 = vrcp.f32 %v1075_v58 }
 0x5da   : > { %v3206_v14 = vpop.permute.xlu1 %3205  ;;  %v3201_v15 = vpop.permute.xlu0 %3200 }
 0x5db   : > { %v3208_v21 = vunpack.i.h.bf16 %v3206_v14  ;;  %v3207_v17 = vunpack.i.l.bf16 %v3206_v14  ;;  %v3203_v31 = vunpack.i.h.bf16 %v3201_v15  ;;  %v3202_v23 = vunpack.i.l.bf16 %v3201_v15 }
 0x5dd   : > { %v3062_v26 = vpack.c.bf16 %v3203_v31, %v3202_v23  ;;  %v3066_v29 = vpack.c.bf16 %v3208_v21, %v3207_v17  ;;  %v3316_v8 = vpop.eup %3315 }
 0x5de   : > { %v1092_v41 = vmul.f32 %v3316_v8, %v3916_v36  ;;  %v3318_v5 = vpop.eup %3317 }
 0x5df   : > { %3063 = vmatprep.subr.bf16.mxu1 %v3062_v26  ;;  %v1093_v39 = vmul.f32 %v3318_v5, %v3912_v20  ;;  %v3264_v20 = vld [vmem:[%s4390_s5 + $0x8] sm:$0xff]  }
 0x5e0   : > { %3065 = vmatpush3.bf16.msra.mxu1 %v3062_v26  ;;  %2889 = vmatpush3.bf16.msra.mxu0 %v3264_v20 }
 0x5e1   : > { %3067 = vmatprep.subr.bf16.mxu1 %v3066_v29  ;;  %v3320_v35 = vpop.eup %3319  ;;  %2894 = vmatprep.subr.bf16.mxu0 %v3448_v40 }
 0x5e2   : > { %v1094_v57 = vmul.f32 %v3320_v35, %v3922_v54  ;;  %v3322_v59 = vpop.eup %3321 }
 0x5e3   : > { %v1095_v24 = vmul.f32 %v3322_v59, %v3920_v51 }
 0x5e4   : > { %3069 = vmatpush3.bf16.msra.mxu1 %v3066_v29 }
 0x5e5   : > { %2902 = vmatprep.subr.bf16.mxu1 %v3448_v40 }
 0x5e7   : > { %2875 = vmatmul.mubr.msk.f32.vlgmr.msra.gmra.mrb[12].mxu1 %vm604_vm0, %v1091_v9 }
 0x5e8   : > { %2877 = vmatprep.mubr.msk.f32.mxu1 %vm604_vm0, %v1092_v41 }
 0x5ef   : > { %2878 = vmatmul.mubr.msk.f32.gmra.mrb[12].mxu1 %vm604_vm0, %v1093_v39 }
 0x5f0   : > { %2880 = vmatprep.mubr.msk.f32.mxu1 %vm604_vm0, %v1094_v57 }
 0x5f7   : > { %2881 = vmatmul.mubr.msk.f32.gmra.mrb[12].mxu1 %vm604_vm0, %v1095_v24 }
 0x60b   : > { %v1078_v36 = vpop.xlane.xlu1 %1077  ;;  %v1081_v53 = vpop.xlane.xlu0 %1080 }
 0x60c   : > { %3323 = vrcp.f32 %v1078_v36 }
 0x60d   : > { %3325 = vrcp.f32 %v1081_v53  ;;  %v3265_v53 = vld [vmem:[%s4392_s7] sm:$0xff]  }
 0x616   : > { %v3324_v55 = vpop.eup %3323 }
 0x617   : > { %v3326_v58 = vpop.eup %3325  ;;  %v1096_v6 = vmul.f32 %v3324_v55, %v3310_v38  ;;  %v3266_v55 = vld [vmem:[%s4392_s7 + $0x8] sm:$0xff]  }
 0x618   : > { %v1097_v14 = vmul.f32 %v3326_v58, %v3308_v34  ;;  %v2614_v34 = vld [vmem:[%s4391_s6] ss:$0 sm:$0xff] }
 0x619   : > { %2883 = vmatprep.mubr.msk.f32.mxu1 %vm604_vm0, %v1096_v6  ;;  %v3267_v58 = vld [vmem:[%s4394_s9] sm:$0xff]   ;;  %v3268_v6 = vld [vmem:[%s4394_s9 + $0x8] sm:$0xff]  }
 0x61a   : > { %2884 = vmatmul.mubr.msk.f32.gmra.mrb[12].mxu1 %vm604_vm0, %v1097_v14 }
 0x61b   : > { %2918 = vmatprep.mubr.msk.bf16.mxu1 %vm3449_vm2, %v3448_v40  ;;  %2903 = vmatpush3.bf16.msra.mxu1 %v3267_v58 }
 0x61c   : > { %2904 = vmatprep.subr.bf16.mxu1 %v3448_v40 }
 0x61f   : > { %2905 = vmatpush3.bf16.msra.mxu1 %v3268_v6 }
 0x620   : > { %2906 = vmatprep.subr.bf16.mxu1 %v3448_v40 }
 0x6ed   : > { %v2885_v51 = vpop.f32.mrb[12].mxu1 }
 0x6ee   : > { %v1250_v54 = vpop.f32.mrb[13].mxu1 }
 0x6ef   : > { %v1270_v15 = vpack.c.bf16 %v2885_v51, %v1250_v54 }
 0x6f1   : > { %2891 = vmatmul.mubr.msk.bf16.vlgmr.msra.gmra.mrb[4].mxu0 %vm665_vm1, %v1270_v15 }
 0x6f2   : > { %2898 = vmatprep.mubr.msk.bf16.mxu0 %vm3449_vm2, %v3448_v40  ;;  %2895 = vmatpush3.bf16.msra.mxu0 %v3265_v53 }
 0x6f3   : > { %2896 = vmatprep.subr.bf16.mxu0 %v3448_v40 }
 0x6f6   : > { %2897 = vmatpush3.bf16.msra.mxu0 %v3266_v55 }
 0x6f7   : > { %2922 = vmatprep.subr.bf16.mxu0 %v3448_v40 }
 0x7c4   : > { %v1326_v38 = vpop.f32.mrb[4].mxu0 }
 0x7c5   : > { %v1327_v21 = vadd.f32 %v2614_v34, %v1326_v38  ;;  %v2892_v17 = vpop.f32.mrb[5].mxu0 }
 0x7c6   : > { %v1329_v31 = vpop.f32.mrb[6].mxu0 }
 0x7c7   : > { %v3974_v23 = vadd.f32 %v1327_v21, %v3637_v22  ;;  %v1330_v26 = vadd.f32 %v2614_v34, %v1329_v31  ;;  %v2893_v29 = vpop.f32.mrb[7].mxu0 }
 0x7c8   : > { %v3269_v29 = vld [vmem:[%s4394_s9 + $0x10] sm:$0xff]  }
 0x7c9   : > { %v3977_v32 = vadd.f32 %v1330_v26, %v3639_v25  ;;  %v1335_v8 = vsel %vm665_vm1, %v3974_v23, 0.0  ;;  %2907 = vmatpush3.bf16.msra.mxu1 %v3269_v29 }
 0x7ca   : > { %1336 = vadd.xlane.f32.xlu0 %v1335_v8  ;;  %2908 = vmatprep.subr.bf16.mxu1 %v3448_v40  ;;  %v3270_v8 = vld [vmem:[%s4394_s9 + $0x18] sm:$0xff]  }
 0x7cb   : > { %v1338_v9 = vsel %vm665_vm1, %v3977_v32, 0.0 }
 0x7cc   : > { %1339 = vadd.xlane.f32.xlu1 %v1338_v9  ;;  %v3271_v9 = vld [vmem:[%s4394_s9 + $0x20] sm:$0xff]  }
 0x7cd   : > { %2909 = vmatpush3.bf16.msra.mxu1 %v3270_v8 }
 0x7ce   : > { %2910 = vmatprep.subr.bf16.mxu1 %v3448_v40 }
 0x7d1   : > { %2911 = vmatpush3.bf16.msra.mxu1 %v3271_v9 }
 0x7d2   : > { %2912 = vmatprep.subr.bf16.mxu1 %v3448_v40 }
 0x857   : > { %v1337_v41 = vpop.xlane.xlu0 %1336 }
 0x858   : > { %v1341_v5 = vmul.f32 0.03125, %v1337_v41  ;;  %v3272_v41 = vld [vmem:[%s4394_s9 + $0x28] sm:$0xff]  }
 0x859   : > { %v1340_v35 = vpop.xlane.xlu1 %1339  ;;  %2913 = vmatpush3.bf16.msra.mxu1 %v3272_v41 }
 0x85a   : > { %v1343_v39 = vsub.f32 %v3974_v23, %v1341_v5  ;;  %v1342_v22 = vmul.f32 0.03125, %v1340_v35  ;;  %2914 = vmatprep.subr.bf16.mxu1 %v3448_v40  ;;  %v3273_v5 = vld [vmem:[%s4394_s9 + $0x30] sm:$0xff]   ;;  %v3274_v35 = vld [vmem:[%s4394_s9 + $0x38] sm:$0xff]  }
 0x85c   : > { %v1344_v57 = vsub.f32 %v3977_v32, %v1342_v22  ;;  %v1345_v59 = vmul.f32 %v1343_v39, %v1343_v39 }
 0x85d   : > { %2915 = vmatpush3.bf16.msra.mxu1 %v3273_v5 }
 0x85e   : > { %v1347_v25 = vsel %vm665_vm1, %v1345_v59, 0.0  ;;  %v1346_v24 = vmul.f32 %v1344_v57, %v1344_v57  ;;  %2916 = vmatprep.subr.bf16.mxu1 %v3448_v40 }
 0x85f   : > { %1348 = vadd.xlane.f32.xlu0 %v1347_v25 }
 0x860   : > { %v1350_v36 = vsel %vm665_vm1, %v1346_v24, 0.0 }
 0x861   : > { %1351 = vadd.xlane.f32.xlu1 %v1350_v36  ;;  %2917 = vmatpush3.bf16.msra.mxu1 %v3274_v35 }
 0x8ec   : > { %v1349_v14 = vpop.xlane.xlu0 %1348 }
 0x8ed   : > { %v1353_v20 = vmul.f32 0.03125, %v1349_v14 }
 0x8ee   : > { %v1352_v51 = vpop.xlane.xlu1 %1351 }
 0x8ef   : > { %v1355_v54 = vadd.f32 1e-06, %v1353_v20  ;;  %v1354_v15 = vmul.f32 0.03125, %v1352_v51 }
 0x8f1   : > { %3327 = vrsqrt.f32 %v1355_v54  ;;  %v1356_v34 = vadd.f32 1e-06, %v1354_v15 }
 0x8f3   : > { %3329 = vrsqrt.f32 %v1356_v34 }
 0x8fb   : > { %v3328_v38 = vpop.eup %3327 }
 0x8fc   : > { %v1359_v17 = vmul.f32 %v3328_v38, %v1343_v39  ;;  %v2618_v39 = vld [vmem:[%s4393_s8] ss:$0 sm:$0xff] }
 0x8fd   : > { %v3330_v21 = vpop.eup %3329 }
 0x8fe   : > { %v1360_v31 = vmul.f32 %v3330_v21, %v1344_v57  ;;  %v2622_v21 = vld [vmem:[%s4395_s10] ss:$0 sm:$0xff] }
 0x900   : > { %v1366_v26 = vpack.c.bf16 %v1360_v31, %v1359_v17 }
 0x902   : > { %2899 = vmatmul.mubr.msk.bf16.vlgmr.msra.gmra.mrb[8].mxu0 %vm665_vm1, %v1366_v26 }
 0x903   : > { %2926 = vmatprep.mubr.msk.bf16.mxu0 %vm3449_vm2, %v3448_v40 }
 0x9d5   : > { %v1422_v22 = vpop.f32.mrb[8].mxu0 }
 0x9d6   : > { %v1423_v57 = vadd.f32 %v2618_v39, %v1422_v22  ;;  %v2900_v59 = vpop.f32.mrb[9].mxu0 }
 0x9d7   : > { %v1425_v25 = vpop.f32.mrb[10].mxu0 }
 0x9d8   : > { %v1431_v24 = vmul.f32 0.70710677, %v1423_v57  ;;  %v1426_v36 = vadd.f32 %v2618_v39, %v1425_v25  ;;  %v2901_v53 = vpop.f32.mrb[11].mxu0  ;;  %v1429_v20 = vmul.f32 0.5, %v1423_v57 }
 0x9da   : > { %3331 = verf.f32 %v1431_v24  ;;  %v1432_v55 = vmul.f32 0.70710677, %v1426_v36  ;;  %v1430_v51 = vmul.f32 0.5, %v1426_v36 }
 0x9dc   : > { %3333 = verf.f32 %v1432_v55 }
 0x9e4   : > { %v3332_v58 = vpop.eup %3331 }
 0x9e5   : > { %v1435_v6 = vadd.f32 1.0, %v3332_v58  ;;  %v3275_v58 = vld [vmem:[%s4388_s3 + $0x10] sm:$0xff]  }
 0x9e6   : > { %v3334_v14 = vpop.eup %3333  ;;  %2923 = vmatpush3.bf16.msra.mxu0 %v3275_v58 }
 0x9e7   : > { %v1436_v54 = vadd.f32 1.0, %v3334_v14  ;;  %v1437_v15 = vmul.f32 %v1435_v6, %v1429_v20  ;;  %v3276_v6 = vld [vmem:[%s4388_s3 + $0x18] sm:$0xff]   ;;  %2924 = vmatprep.subr.bf16.mxu0 %v3448_v40 }
 0x9e9   : > { %v1438_v34 = vmul.f32 %v1436_v54, %v1430_v51 }
 0x9ea   : > { %2925 = vmatpush3.bf16.msra.mxu0 %v3276_v6 }
 0x9eb   : > { %v1456_v38 = vpack.c.bf16 %v1438_v34, %v1437_v15 }
 0x9ed   : > { %2919 = vmatmul.mubr.bf16.vlgmr.msra.gmra.mrb[16].mxu1 %v1456_v38 }
 0xac0   : > { %v1545_v17 = vpop.f32.mrb[16].mxu1 }
 0xac1   : > { %v1546_v31 = vadd.f32 %v2622_v21, %v1545_v17  ;;  %v2920_v26 = vpop.f32.mrb[17].mxu1 }
 0xac2   : > { %v1548_v29 = vpop.f32.mrb[18].mxu1 }
 0xac3   : > { %v4036_v8 = vadd.f32 %v1546_v31, %v3974_v23  ;;  %v1549_v9 = vadd.f32 %v2622_v21, %v1548_v29  ;;  %v2921_v41 = vpop.f32.mrb[19].mxu1  ;;  %v2636_v29 = vld [vmem:[%s4389_s4 + $0x1] ss:$0 sm:$0xff] }
 0xac5   : > { %v4039_v5 = vadd.f32 %v1549_v9, %v3977_v32  ;;  %v1554_v35 = vsel %vm665_vm1, %v4036_v8, 0.0 }
 0xac6   : > { %1555 = vadd.xlane.f32.xlu0 %v1554_v35 }
 0xac7   : > { %v1557_v39 = vsel %vm665_vm1, %v4039_v5, 0.0 }
 0xac8   : > { %1558 = vadd.xlane.f32.xlu1 %v1557_v39 }
 0xb53   : > { %v1556_v22 = vpop.xlane.xlu0 %1555 }
 0xb54   : > { %v1560_v57 = vmul.f32 0.03125, %v1556_v22 }
 0xb55   : > { %v1559_v59 = vpop.xlane.xlu1 %1558 }
 0xb56   : > { %v1562_v25 = vsub.f32 %v4036_v8, %v1560_v57  ;;  %v1561_v23 = vmul.f32 0.03125, %v1559_v59 }
 0xb58   : > { %v1563_v24 = vsub.f32 %v4039_v5, %v1561_v23  ;;  %v1564_v36 = vmul.f32 %v1562_v25, %v1562_v25 }
 0xb5a   : > { %v1566_v32 = vsel %vm665_vm1, %v1564_v36, 0.0  ;;  %v1565_v53 = vmul.f32 %v1563_v24, %v1563_v24 }
 0xb5b   : > { %1567 = vadd.xlane.f32.xlu0 %v1566_v32 }
 0xb5c   : > { %v1569_v55 = vsel %vm665_vm1, %v1565_v53, 0.0 }
 0xb5d   : > { %1570 = vadd.xlane.f32.xlu1 %v1569_v55 }
 0xbe8   : > { %v1568_v14 = vpop.xlane.xlu0 %1567 }
 0xbe9   : > { %v1572_v20 = vmul.f32 0.03125, %v1568_v14 }
 0xbea   : > { %v1571_v51 = vpop.xlane.xlu1 %1570 }
 0xbeb   : > { %v1574_v54 = vadd.f32 1e-06, %v1572_v20  ;;  %v1573_v15 = vmul.f32 0.03125, %v1571_v51 }
 0xbed   : > { %3335 = vrsqrt.f32 %v1574_v54  ;;  %v1575_v34 = vadd.f32 1e-06, %v1573_v15 }
 0xbef   : > { %3337 = vrsqrt.f32 %v1575_v34 }
 0xbf7   : > { %v3336_v38 = vpop.eup %3335 }
 0xbf8   : > { %v1578_v17 = vmul.f32 %v3336_v38, %v1562_v25 }
 0xbf9   : > { %v3338_v21 = vpop.eup %3337 }
 0xbfa   : > { %v1579_v31 = vmul.f32 %v3338_v21, %v1563_v24 }
 0xbfc   : > { %v1587_v26 = vpack.c.bf16 %v1579_v31, %v1578_v17 }
 0xbfe   : > { %2927 = vmatmul.mubr.msk.bf16.vlgmr.msra.gmra.mrb[12].mxu0 %vm665_vm1, %v1587_v26 }
 0xcd1   : > { %v1643_v9 = vpop.f32.mrb[12].mxu0 }
 0xcd2   : > { %v4060_v41 = vadd.f32 %v2636_v29, %v1643_v9  ;;  %v2928_v35 = vpop.f32.mrb[13].mxu0 }
 0xcd3   : > { %v1646_v39 = vpop.f32.mrb[14].mxu0 }
 0xcd4   : > { %v4062_v22 = vadd.f32 %v2636_v29, %v1646_v39  ;;  %v2929_v57 = vpop.f32.mrb[15].mxu0  ;;  %v1650_v59 = vmul.f32 %v4060_v41, %v3670_v43  ;;  %v1660_v25 = vmul.f32 %v4060_v41, %v3713_v62  ;;  %v1658_v23 = vmul.f32 %v4060_v41, %v3717_v0 }
 0xcd5   : > { %v1662_v24 = vmul.f32 %v4060_v41, %v3724_v3  ;;  %v1664_v36 = vmul.f32 %v4060_v41, %v3743_v16  ;;  %v4085_v16 = vmul.f32 %v4060_v41, %v3878_v50  ;;  %v1652_v57 = vmul.f32 %v4060_v41, %v3677_v44 }
 0xcd6   : > { %2946 = vmatprep.mubr.msk.f32.mxu0 %vm665_vm1, %v1650_v59  ;;  %v1661_v32 = vmul.f32 %v4062_v22, %v3715_v63  ;;  %v1659_v43 = vmul.f32 %v4062_v22, %v3711_v61  ;;  %v1663_v62 = vmul.f32 %v4062_v22, %v3722_v2  ;;  %v1665_v0 = vmul.f32 %v4062_v22, %v3732_v11 }
 0xcd7   : > { %v4089_v63 = vmul.f32 %v4062_v22, %v3882_v52  ;;  %v4093_v61 = vmul.f32 %v4060_v41, %v3889_v56  ;;  %v4099_v2 = vmul.f32 %v4062_v22, %v3860_v30  ;;  %v4103_v11 = vmul.f32 %v4060_v41, %v3902_v13 }
 0xcd8   : > { %v3214_v53 = vpack.i.bf16 %v1661_v32, %v1660_v25  ;;  %v3209_v55 = vpack.i.bf16 %v1659_v43, %v1658_v23  ;;  %v3219_v3 = vpack.i.bf16 %v1663_v62, %v1662_v24  ;;  %v3224_v58 = vpack.i.bf16 %v1665_v0, %v1664_v36 }
 0xcd9   : > { %v4107_v50 = vmul.f32 %v4062_v22, %v3900_v12  ;;  %v3234_v52 = vpack.i.bf16 %v4089_v63, %v4085_v16  ;;  %v4113_v56 = vmul.f32 %v4060_v41, %v3898_v7  ;;  %v4117_v6 = vmul.f32 %v4062_v22, %v3896_v4 }
 0xcda   : > { %3215 = vrot.lane.b32.xlu1 %v3214_v53, %s3451_s27  ;;  %3210 = vrot.lane.b32.xlu0 %v3209_v55, %s3451_s27  ;;  %v3229_v30 = vpack.i.bf16 %v4099_v2, %v4093_v61  ;;  %v1651_v39 = vmul.f32 %v4062_v22, %v3665_v42  ;;  %v1653_v59 = vmul.f32 %v4062_v22, %v3689_v46 }
 0xcdb   : > { %v3244_v13 = vpack.i.bf16 %v4107_v50, %v4103_v11  ;;  %v3239_v12 = vpack.i.bf16 %v4117_v6, %v4113_v56  ;;  %v1654_v25 = vmul.f32 %v4060_v41, %v3682_v45  ;;  %v1655_v42 = vmul.f32 %v4062_v22, %v3701_v48 }
 0xcdc   : > { %v1656_v44 = vmul.f32 %v4060_v41, %v3694_v47  ;;  %v1657_v46 = vmul.f32 %v4062_v22, %v3707_v49 }
 0xcde   : > { %3220 = vrot.lane.b32.xlu1 %v3219_v3, %s3451_s27 }
 0xce2   : > { %3225 = vrot.lane.b32.xlu1 %v3224_v58, %s3451_s27  ;;  %s4417_s27 = smov 64  }
 0xd4c   : > { %v3216_v14 = vpop.permute.xlu1 %3215  ;;  %v3211_v7 = vpop.permute.xlu0 %3210 }
 0xd4d   : > { %v3218_v20 = vunpack.i.h.bf16 %v3216_v14  ;;  %v3217_v51 = vunpack.i.l.bf16 %v3216_v14  ;;  %v3213_v54 = vunpack.i.h.bf16 %v3211_v7  ;;  %v3212_v4 = vunpack.i.l.bf16 %v3211_v7 }
 0xd4f   : > { %v3070_v15 = vpack.c.bf16 %v3213_v54, %v3212_v4  ;;  %v3076_v34 = vpack.c.bf16 %v3218_v20, %v3217_v51 }
 0xd50   : > { %v3221_v38 = vpop.permute.xlu1 %3220 }
 0xd51   : > { %3072 = vmatprep.subr.msk.bf16.mxu0 %vm3775_vm3, %v3070_v15  ;;  %v3223_v21 = vunpack.i.h.bf16 %v3221_v38  ;;  %v3222_v17 = vunpack.i.l.bf16 %v3221_v38 }
 0xd52   : > { %3075 = vmatpush3.bf16.xpose.msk.msra.mxu0 %vm3775_vm3, %v3070_v15 }
 0xd53   : > { %3078 = vmatprep.subr.msk.bf16.mxu0 %vm3775_vm3, %v3076_v34  ;;  %v3082_v31 = vpack.c.bf16 %v3223_v21, %v3222_v17 }
 0xd54   : > { %v3226_v26 = vpop.permute.xlu1 %3225 }
 0xd55   : > { %v3228_v29 = vunpack.i.h.bf16 %v3226_v26  ;;  %v3227_v9 = vunpack.i.l.bf16 %v3226_v26 }
 0xd57   : > { %v3088_v35 = vpack.c.bf16 %v3228_v29, %v3227_v9 }
 0xd5a   : > { %3081 = vmatpush3.bf16.xpose.msk.msra.mxu0 %vm3775_vm3, %v3076_v34 }
 0xd5b   : > { %3084 = vmatprep.subr.msk.bf16.mxu0 %vm3775_vm3, %v3082_v31 }
 0xd62   : > { %3087 = vmatpush3.bf16.xpose.msk.msra.mxu0 %vm3775_vm3, %v3082_v31 }
 0xd63   : > { %3090 = vmatprep.subr.msk.bf16.mxu0 %vm3775_vm3, %v3088_v35 }
 0xd6a   : > { %3093 = vmatpush3.bf16.xpose.msk.msra.mxu0 %vm3775_vm3, %v3088_v35 }
 0xd6b   : > { %3002 = vmatprep.subr.bf16.mxu0 %v3448_v40 }
 0xd71   : > { %2947 = vmatmul.mubr.msk.f32.vlgmr.msra.gmra.mrb[16].mxu0 %vm665_vm1, %v1651_v39 }
 0xd72   : > { %2949 = vmatprep.mubr.msk.f32.mxu0 %vm665_vm1, %v1652_v57 }
 0xd75   : > { %2950 = vmatmul.mubr.msk.f32.gmra.mrb[18].mxu0 %vm665_vm1, %v1653_v59 }
 0xd76   : > { %2952 = vmatprep.mubr.msk.f32.mxu0 %vm665_vm1, %v1654_v25 }
 0xd79   : > { %2953 = vmatmul.mubr.msk.f32.gmra.mrb[20].mxu0 %vm665_vm1, %v1655_v42 }
 0xd7a   : > { %2955 = vmatprep.mubr.msk.f32.mxu0 %vm665_vm1, %v1656_v44 }
 0xd7d   : > { %2956 = vmatmul.mubr.msk.f32.gmra.mrb[22].mxu0 %vm665_vm1, %v1657_v46 }
 0xd7e   : > { %3018 = vmatprep.mubr.msk.bf16.mxu0 %vm3449_vm2, %v3448_v40 }
 0xe44   : > { %v2948_v45 = vpop.f32.mrb[16].mxu0 }
 0xe45   : > { %v1810_v33 = vadd.f32 %v2948_v45, %v3819_v60  ;;  %v1804_v23 = vpop.f32.mrb[17].mxu0 }
 0xe46   : > { %v1805_v48 = vadd.f32 %v1804_v23, %v3824_v1 }
 0xe47   : > { %v1846_v47 = vsel %vm604_vm0, %v1810_v33, -inf }
 0xe48   : > { %1847 = vmax.xlane.f32.xlu1 %v1846_v47  ;;  %v2951_v41 = vpop.f32.mrb[18].mxu0  ;;  %v1843_v24 = vsel %vm604_vm0, %v1805_v48, -inf }
 0xe49   : > { %v1820_v36 = vadd.f32 %v2951_v41, %v3831_v10  ;;  %v1814_v49 = vpop.f32.mrb[19].mxu0  ;;  %1844 = vmax.xlane.f32.xlu0 %v1843_v24 }
 0xe4a   : > { %v1815_v32 = vadd.f32 %v1814_v49, %v3839_v18 }
 0xe4b   : > { %v1852_v22 = vsel %vm604_vm0, %v1820_v36, -inf }
 0xe4c   : > { %v2954_v43 = vpop.f32.mrb[20].mxu0  ;;  %v1849_v55 = vsel %vm604_vm0, %v1815_v32, -inf }
 0xe4d   : > { %v1830_v60 = vadd.f32 %v2954_v43, %v3844_v19  ;;  %v1824_v62 = vpop.f32.mrb[21].mxu0  ;;  %1853 = vmax.xlane.f32.xlu0 %v1852_v22 }
 0xe4e   : > { %v1825_v0 = vadd.f32 %v1824_v62, %v3852_v27 }
 0xe4f   : > { %v1858_v1 = vsel %vm604_vm0, %v1830_v60, -inf }
 0xe50   : > { %1859 = vmax.xlane.f32.xlu1 %v1858_v1  ;;  %v2957_v53 = vpop.f32.mrb[22].mxu0  ;;  %v1855_v58 = vsel %vm604_vm0, %v1825_v0, -inf }
 0xe51   : > { %v4179_v10 = vadd.f32 %v2957_v53, %v3857_v28  ;;  %v1834_v3 = vpop.f32.mrb[23].mxu0  ;;  %1850 = vmax.xlane.f32.xlu0 %v1849_v55 }
 0xe52   : > { %v4184_v19 = vadd.f32 %v1834_v3, %v3870_v37 }
 0xe53   : > { %v1864_v18 = vsel %vm604_vm0, %v4179_v10, -inf }
 0xe54   : > { %1865 = vmax.xlane.f32.xlu1 %v1864_v18  ;;  %v1861_v27 = vsel %vm604_vm0, %v4184_v19, -inf }
 0xe55   : > { %1856 = vmax.xlane.f32.xlu0 %v1855_v58 }
 0xe59   : > { %1862 = vmax.xlane.f32.xlu0 %v1861_v27 }
 0xe65   : > { %3235 = vrot.lane.b32.xlu1 %v3234_v52, %s4417_s27 }
 0xe6f   : > { %3230 = vrot.lane.b32.xlu0 %v3229_v30, %s4417_s27 }
 0xed5   : > { %v1848_v28 = vpop.xlane.xlu1 %1847 }
 0xed6   : > { %v1868_v37 = vsub.f32 %v1810_v33, %v1848_v28  ;;  %v1845_v14 = vpop.xlane.xlu0 %1844 }
 0xed7   : > { %v1867_v7 = vsub.f32 %v1805_v48, %v1845_v14 }
 0xed8   : > { %v1877_v20 = vmul.f32 1.442695, %v1868_v37 }
 0xed9   : > { %v1875_v51 = vmul.f32 1.442695, %v1867_v7 }
 0xeda   : > { %3339 = vpow2.f32 %v1877_v20  ;;  %v1854_v54 = vpop.xlane.xlu0 %1853 }
 0xedb   : > { %3341 = vpow2.f32 %v1875_v51  ;;  %v1870_v4 = vsub.f32 %v1820_v36, %v1854_v54  ;;  %v3277_v51 = vld [vmem:[%s4390_s5 + $0x10] sm:$0xff]  }
 0xedd   : > { %v1881_v15 = vmul.f32 1.442695, %v1870_v4  ;;  %v1860_v34 = vpop.xlane.xlu1 %1859 }
 0xede   : > { %v1872_v38 = vsub.f32 %v1830_v60, %v1860_v34  ;;  %v1851_v16 = vpop.xlane.xlu0 %1850 }
 0xedf   : > { %3343 = vpow2.f32 %v1881_v15  ;;  %v1869_v63 = vsub.f32 %v1815_v32, %v1851_v16  ;;  %v3278_v15 = vld [vmem:[%s4390_s5 + $0x18] sm:$0xff]  }
 0xee0   : > { %v1885_v52 = vmul.f32 1.442695, %v1872_v38 }
 0xee1   : > { %v1879_v21 = vmul.f32 1.442695, %v1869_v63  ;;  %v1866_v61 = vpop.xlane.xlu1 %1865 }
 0xee2   : > { %v1857_v2 = vpop.xlane.xlu0 %1856  ;;  %v1874_v22 = vsub.f32 %v4179_v10, %v1866_v61 }
 0xee3   : > { %3345 = vpow2.f32 %v1879_v21  ;;  %v1871_v30 = vsub.f32 %v1825_v0, %v1857_v2 }
 0xee4   : > { %v4197_v17 = vpop.eup %3339  ;;  %3347 = vpow2.f32 %v1885_v52  ;;  %v1889_v43 = vmul.f32 1.442695, %v1874_v22 }
 0xee5   : > { %v3342_v31 = vpop.eup %3341  ;;  %v1883_v26 = vmul.f32 1.442695, %v1871_v30  ;;  %v1894_v29 = vsel %vm604_vm0, %v4197_v17, 0.0  ;;  %v3236_v39 = vpop.permute.xlu1 %3235 }
 0xee6   : > { %1895 = vadd.xlane.f32.xlu1 %v1894_v29  ;;  %v1863_v9 = vpop.xlane.xlu0 %1862  ;;  %v1891_v35 = vsel %vm604_vm0, %v3342_v31, 0.0  ;;  %v3238_v42 = vunpack.i.h.bf16 %v3236_v39  ;;  %v3237_v44 = vunpack.i.l.bf16 %v3236_v39  ;;  %v2669_v39 = vld [vmem:[%s4391_s6 + $0x1] ss:$0 sm:$0xff] }
 0xee7   : > { %3349 = vpow2.f32 %v1883_v26  ;;  %1892 = vadd.xlane.f32.xlu0 %v1891_v35  ;;  %v1873_v32 = vsub.f32 %v4184_v19, %v1863_v9 }
 0xee8   : > { %v3098_v41 = vpack.c.bf16 %v3238_v42, %v3237_v44  ;;  %3351 = vpow2.f32 %v1889_v43 }
 0xee9   : > { %v4202_v57 = vpop.eup %3343  ;;  %v1887_v60 = vmul.f32 1.442695, %v1873_v32 }
 0xeea   : > { %v3231_v59 = vpop.permute.xlu0 %3230  ;;  %v1900_v25 = vsel %vm604_vm0, %v4202_v57, 0.0 }
 0xeeb   : > { %v3233_v46 = vunpack.i.h.bf16 %v3231_v59  ;;  %v3232_v45 = vunpack.i.l.bf16 %v3231_v59  ;;  %1901 = vadd.xlane.f32.xlu1 %v1900_v25  ;;  %3353 = vpow2.f32 %v1887_v60  ;;  %v3279_v60 = vld [vmem:[%s4392_s7 + $0x10] sm:$0xff]  }
 0xeed   : > { %v3346_v33 = vpop.eup %3345  ;;  %v3094_v23 = vpack.c.bf16 %v3233_v46, %v3232_v45 }
 0xeee   : > { %v1897_v48 = vsel %vm604_vm0, %v3346_v33, 0.0  ;;  %v4207_v47 = vpop.eup %3347 }
 0xeef   : > { %1898 = vadd.xlane.f32.xlu0 %v1897_v48  ;;  %3095 = vmatprep.subr.bf16.mxu1 %v3094_v23  ;;  %v1906_v36 = vsel %vm604_vm0, %v4207_v47, 0.0 }
 0xef0   : > { %3097 = vmatpush3.bf16.msra.mxu1 %v3094_v23 }
 0xef1   : > { %v4209_v24 = vpop.eup %3349  ;;  %3099 = vmatprep.subr.bf16.mxu1 %v3098_v41 }
 0xef2   : > { %v1903_v49 = vsel %vm604_vm0, %v4209_v24, 0.0  ;;  %v3352_v62 = vpop.eup %3351 }
 0xef3   : > { %1907 = vadd.xlane.f32.xlu0 %v1906_v36  ;;  %1904 = vadd.xlane.f32.xlu1 %v1903_v49  ;;  %v1912_v0 = vsel %vm604_vm0, %v3352_v62, 0.0 }
 0xef4   : > { %3101 = vmatpush3.bf16.msra.mxu1 %v3098_v41 }
 0xef5   : > { %v3354_v1 = vpop.eup %3353 }
 0xef6   : > { %v1909_v11 = vsel %vm604_vm0, %v3354_v1, 0.0 }
 0xf04   : > { %3245 = vrot.lane.b32.xlu1 %v3244_v13, %s4417_s27 }
 0xf09   : > { %3240 = vrot.lane.b32.xlu0 %v3239_v12, %s4417_s27  ;;  %s2569_s27 = sshll.u32 %s488_s17, 4 }
 0xf0a   : > { %s490_s26 = scalar_lea.vmem [#allocation2], %s2569_s27  ;;  %s4344_s27 = scalar_lea.sflag [#allocation3], %s488_s17 }
 0xf0b   : > { %s2503_s24 = sshll.u32 %s490_s26, 4  ;;  %s4337_s24 = int_to_ptr.vmem [resolvable:$true] %s2503_s24 }
 0xf0c   : > { %s3383_s22 = scalar_lea.vmem %s4337_s24, 256  ;;  %p3390_p0 = scmp.lt.s32.totalorder %s4337_s24, %s3388_s0 }
 0xf0d   : > { %p3384_p11 = scmp.ne.s32.totalorder %s4337_s24, %s3383_s22  ;;  %p3391_p1 = scmp.lt.s32.totalorder %s3389_s1, %s3383_s22 }
 0xf0f   : > { %p3385_p12 = pnand %p3384_p11, %p3574_p5  ;;  %p3392_p2 = por %p3391_p1, %p3390_p0 }
 0xf11   : > { %p3386_p13 = pneg %p3385_p12 }
 0xf13   : > { %p3393_p3 = pnand %p3392_p2, %p3386_p13 }
 0xf28   : > { %1913 = vadd.xlane.f32.xlu0 %v1912_v0  ;;  %1910 = vadd.xlane.f32.xlu1 %v1909_v11  ;;  %v3282_v0 = vld [vmem:[%s4394_s9 + $0x48] sm:$0xff]  }
 0xf73   : > { %v1896_v56 = vpop.xlane.xlu1 %1895 }
 0xf74   : > { %v1893_v50 = vpop.xlane.xlu0 %1892 }
 0xf75   : > { %3355 = vrcp.f32 %v1893_v50 }
 0xf76   : > { %3357 = vrcp.f32 %v1896_v56 }
 0xf78   : > { %v1902_v6 = vpop.xlane.xlu1 %1901 }
 0xf7c   : > { %v1899_v13 = vpop.xlane.xlu0 %1898 }
 0xf7d   : > { %3359 = vrcp.f32 %v1899_v13 }
 0xf7e   : > { %3361 = vrcp.f32 %v1902_v6 }
 0xf7f   : > { %v3356_v12 = vpop.eup %3355 }
 0xf80   : > { %v1905_v53 = vpop.xlane.xlu1 %1904  ;;  %v1908_v55 = vpop.xlane.xlu0 %1907  ;;  %v1923_v10 = vmul.f32 %v3356_v12, %v3342_v31 }
 0xf81   : > { %3363 = vrcp.f32 %v1905_v53  ;;  %v3358_v7 = vpop.eup %3357 }
 0xf82   : > { %2974 = vmatprep.mubr.msk.f32.mxu1 %vm604_vm0, %v1923_v10  ;;  %v1924_v54 = vmul.f32 %v3358_v7, %v4197_v17  ;;  %3365 = vrcp.f32 %v1908_v55  ;;  %v2678_v7 = vld [vmem:[%s4393_s8 + $0x1] ss:$0 sm:$0xff] }
 0xf84   : > { %v3246_v3 = vpop.permute.xlu1 %3245  ;;  %v3241_v18 = vpop.permute.xlu0 %3240 }
 0xf85   : > { %v3248_v19 = vunpack.i.h.bf16 %v3246_v3  ;;  %v3247_v58 = vunpack.i.l.bf16 %v3246_v3  ;;  %v3243_v27 = vunpack.i.h.bf16 %v3241_v18  ;;  %v3242_v28 = vunpack.i.l.bf16 %v3241_v18 }
 0xf87   : > { %v3102_v37 = vpack.c.bf16 %v3243_v27, %v3242_v28  ;;  %v3106_v14 = vpack.c.bf16 %v3248_v19, %v3247_v58  ;;  %v3360_v20 = vpop.eup %3359  ;;  %v3283_v19 = vld [vmem:[%s4394_s9 + $0x50] sm:$0xff]   ;;  %v3284_v58 = vld [vmem:[%s4394_s9 + $0x58] sm:$0xff]   ;;  %v3285_v27 = vld [vmem:[%s4394_s9 + $0x60] sm:$0xff]  }
 0xf88   : > { %v1925_v4 = vmul.f32 %v3360_v20, %v3346_v33  ;;  %v3362_v34 = vpop.eup %3361  ;;  %v3286_v28 = vld [vmem:[%s4394_s9 + $0x68] sm:$0xff]  }
 0xf89   : > { %3103 = vmatprep.subr.bf16.mxu1 %v3102_v37  ;;  %v1926_v16 = vmul.f32 %v3362_v34, %v4202_v57 }
 0xf8a   : > { %3105 = vmatpush3.bf16.msra.mxu1 %v3102_v37  ;;  %v3287_v37 = vld [vmem:[%s4394_s9 + $0x70] sm:$0xff]  }
 0xf8b   : > { %3107 = vmatprep.subr.bf16.mxu1 %v3106_v14  ;;  %v3364_v38 = vpop.eup %3363 }
 0xf8c   : > { %v1927_v63 = vmul.f32 %v3364_v38, %v4209_v24  ;;  %v3366_v52 = vpop.eup %3365 }
 0xf8d   : > { %v1928_v21 = vmul.f32 %v3366_v52, %v4207_v47 }
 0xf8e   : > { %3109 = vmatpush3.bf16.msra.mxu1 %v3106_v14  ;;  %v3288_v14 = vld [vmem:[%s4394_s9 + $0x78] sm:$0xff]  }
 0xf8f   : > { %2986 = vmatprep.subr.bf16.mxu1 %v3448_v40 }
 0xf91   : > { %2975 = vmatmul.mubr.msk.f32.vlgmr.msra.gmra.mrb[14].mxu1 %vm604_vm0, %v1924_v54 }
 0xf92   : > { %2977 = vmatprep.mubr.msk.f32.mxu1 %vm604_vm0, %v1925_v4  ;;  %2987 = vmatpush3.bf16.msra.mxu1 %v3277_v51 }
 0xf93   : > { %2988 = vmatprep.subr.bf16.mxu1 %v3448_v40 }
 0xf96   : > { %2989 = vmatpush3.bf16.msra.mxu1 %v3278_v15 }
 0xf97   : > { %2994 = vmatprep.subr.bf16.mxu1 %v3448_v40 }
 0xf99   : > { %2978 = vmatmul.mubr.msk.f32.gmra.mrb[14].mxu1 %vm604_vm0, %v1926_v16 }
 0xf9a   : > { %2980 = vmatprep.mubr.msk.f32.mxu1 %vm604_vm0, %v1927_v63 }
 0xfa1   : > { %2981 = vmatmul.mubr.msk.f32.gmra.mrb[14].mxu1 %vm604_vm0, %v1928_v21 }
 0xfb5   : > { %v1911_v61 = vpop.xlane.xlu1 %1910  ;;  %v1914_v2 = vpop.xlane.xlu0 %1913 }
 0xfb6   : > { %3367 = vrcp.f32 %v1911_v61 }
 0xfb7   : > { %3369 = vrcp.f32 %v1914_v2 }
 0xfc0   : > { %v3368_v30 = vpop.eup %3367 }
 0xfc1   : > { %v3370_v17 = vpop.eup %3369  ;;  %v1929_v31 = vmul.f32 %v3368_v30, %v3354_v1  ;;  %v3281_v1 = vld [vmem:[%s4394_s9 + $0x40] sm:$0xff]  }
 0xfc2   : > { %v1930_v26 = vmul.f32 %v3370_v17, %v3352_v62  ;;  %v3280_v62 = vld [vmem:[%s4392_s7 + $0x18] sm:$0xff]   ;;  %3003 = vmatpush3.bf16.msra.mxu0 %v3281_v1 }
 0xfc3   : > { %2983 = vmatprep.mubr.msk.f32.mxu1 %vm604_vm0, %v1929_v31  ;;  %3004 = vmatprep.subr.bf16.mxu0 %v3448_v40 }
 0xfc4   : > { %2984 = vmatmul.mubr.msk.f32.gmra.mrb[14].mxu1 %vm604_vm0, %v1930_v26 }
 0xfc5   : > { %2990 = vmatprep.mubr.msk.bf16.mxu1 %vm3449_vm2, %v3448_v40 }
 0xfc6   : > { %3005 = vmatpush3.bf16.msra.mxu0 %v3282_v0 }
 0xfc7   : > { %3006 = vmatprep.subr.bf16.mxu0 %v3448_v40 }
 0xfca   : > { %3007 = vmatpush3.bf16.msra.mxu0 %v3283_v19 }
 0xfcb   : > { %3008 = vmatprep.subr.bf16.mxu0 %v3448_v40 }
 0xfce   : > { %3009 = vmatpush3.bf16.msra.mxu0 %v3284_v58 }
 0xfcf   : > { %3010 = vmatprep.subr.bf16.mxu0 %v3448_v40 }
 0xfd2   : > { %3011 = vmatpush3.bf16.msra.mxu0 %v3285_v27 }
 0xfd3   : > { %3012 = vmatprep.subr.bf16.mxu0 %v3448_v40 }
 0xfd6   : > { %3013 = vmatpush3.bf16.msra.mxu0 %v3286_v28 }
 0xfd7   : > { %3014 = vmatprep.subr.bf16.mxu0 %v3448_v40 }
 0xfda   : > { %3015 = vmatpush3.bf16.msra.mxu0 %v3287_v37 }
 0xfdb   : > { %3016 = vmatprep.subr.bf16.mxu0 %v3448_v40 }
 0xfde   : > { %3017 = vmatpush3.bf16.msra.mxu0 %v3288_v14 }
0x1097   : > { %v2985_v29 = vpop.f32.mrb[14].mxu1 }
0x1098   : > { %v2083_v9 = vpop.f32.mrb[15].mxu1 }
0x1099   : > { %v2105_v35 = vpack.c.bf16 %v2985_v29, %v2083_v9  ;;  %v2699_v29 = vld [vmem:[%s4395_s10 + $0x1] ss:$0 sm:$0xff] }
0x109b   : > { %2991 = vmatmul.mubr.msk.bf16.vlgmr.msra.gmra.mrb[20].mxu1 %vm665_vm1, %v2105_v35 }
0x109c   : > { %2998 = vmatprep.mubr.msk.bf16.mxu1 %vm3449_vm2, %v3448_v40  ;;  %2995 = vmatpush3.bf16.msra.mxu1 %v3279_v60 }
0x109d   : > { %2996 = vmatprep.subr.bf16.mxu1 %v3448_v40 }
0x10a0   : > { %2997 = vmatpush3.bf16.msra.mxu1 %v3280_v62 }
0x10a1   : > { %3022 = vmatprep.subr.bf16.mxu1 %v3448_v40 }
0x116e   : > { %v2161_v57 = vpop.f32.mrb[20].mxu1 }
0x116f   : > { %v2162_v59 = vadd.f32 %v2669_v39, %v2161_v57  ;;  %v2992_v25 = vpop.f32.mrb[21].mxu1 }
0x1170   : > { %v2164_v42 = vpop.f32.mrb[22].mxu1 }
0x1171   : > { %v4257_v44 = vadd.f32 %v2162_v59, %v4036_v8  ;;  %v2165_v46 = vadd.f32 %v2669_v39, %v2164_v42  ;;  %v2993_v45 = vpop.f32.mrb[23].mxu1 }
0x1173   : > { %v4260_v33 = vadd.f32 %v2165_v46, %v4039_v5  ;;  %v2170_v23 = vsel %vm665_vm1, %v4257_v44, 0.0 }
0x1174   : > { %2171 = vadd.xlane.f32.xlu0 %v2170_v23 }
0x1175   : > { %v2173_v48 = vsel %vm665_vm1, %v4260_v33, 0.0 }
0x1176   : > { %2174 = vadd.xlane.f32.xlu1 %v2173_v48 }
0x1201   : > { %v2172_v47 = vpop.xlane.xlu0 %2171 }
0x1202   : > { %v2176_v41 = vmul.f32 0.03125, %v2172_v47 }
0x1203   : > { %v2175_v24 = vpop.xlane.xlu1 %2174 }
0x1204   : > { %v2178_v36 = vsub.f32 %v4257_v44, %v2176_v41  ;;  %v2177_v8 = vmul.f32 0.03125, %v2175_v24 }
0x1206   : > { %v2179_v49 = vsub.f32 %v4260_v33, %v2177_v8  ;;  %v2180_v22 = vmul.f32 %v2178_v36, %v2178_v36 }
0x1208   : > { %v2182_v5 = vsel %vm665_vm1, %v2180_v22, 0.0  ;;  %v2181_v32 = vmul.f32 %v2179_v49, %v2179_v49 }
0x1209   : > { %2183 = vadd.xlane.f32.xlu0 %v2182_v5 }
0x120a   : > { %v2185_v43 = vsel %vm665_vm1, %v2181_v32, 0.0  ;;  %v3290_v32 = vld [vmem:[%s4396_s11 + $0x8] sm:$0xff]  }
0x120b   : > { %2186 = vadd.xlane.f32.xlu1 %v2185_v43 }
0x1296   : > { %v2184_v11 = vpop.xlane.xlu0 %2183 }
0x1297   : > { %v2188_v50 = vmul.f32 0.03125, %v2184_v11 }
0x1298   : > { %v2187_v56 = vpop.xlane.xlu1 %2186 }
0x1299   : > { %v2190_v6 = vadd.f32 1e-06, %v2188_v50  ;;  %v2189_v13 = vmul.f32 0.03125, %v2187_v56 }
0x129b   : > { %3371 = vrsqrt.f32 %v2190_v6  ;;  %v2191_v12 = vadd.f32 1e-06, %v2189_v13 }
0x129d   : > { %3373 = vrsqrt.f32 %v2191_v12 }
0x12a5   : > { %v3372_v53 = vpop.eup %3371 }
0x12a6   : > { %v2194_v10 = vmul.f32 %v3372_v53, %v2178_v36 }
0x12a7   : > { %v3374_v55 = vpop.eup %3373 }
0x12a8   : > { %v2195_v3 = vmul.f32 %v3374_v55, %v2179_v49 }
0x12aa   : > { %v2203_v18 = vpack.c.bf16 %v2195_v3, %v2194_v10 }
0x12ac   : > { %2999 = vmatmul.mubr.msk.bf16.vlgmr.msra.gmra.mrb[24].mxu1 %vm665_vm1, %v2203_v18 }
0x12ad   : > { %3026 = vmatprep.mubr.msk.bf16.mxu1 %vm3449_vm2, %v3448_v40 }
0x137f   : > { %v2259_v20 = vpop.f32.mrb[24].mxu1 }
0x1380   : > { %v2260_v51 = vadd.f32 %v2678_v7, %v2259_v20  ;;  %v3000_v54 = vpop.f32.mrb[25].mxu1 }
0x1381   : > { %v2262_v4 = vpop.f32.mrb[26].mxu1 }
0x1382   : > { %v2268_v15 = vmul.f32 0.70710677, %v2260_v51  ;;  %v2263_v34 = vadd.f32 %v2678_v7, %v2262_v4  ;;  %v3001_v38 = vpop.f32.mrb[27].mxu1  ;;  %v2266_v61 = vmul.f32 0.5, %v2260_v51 }
0x1384   : > { %3375 = verf.f32 %v2268_v15  ;;  %v2269_v16 = vmul.f32 0.70710677, %v2263_v34  ;;  %v2267_v2 = vmul.f32 0.5, %v2263_v34 }
0x1386   : > { %3377 = verf.f32 %v2269_v16 }
0x138e   : > { %v3376_v63 = vpop.eup %3375 }
0x138f   : > { %v2272_v52 = vadd.f32 1.0, %v3376_v63 }
0x1390   : > { %v3378_v21 = vpop.eup %3377 }
0x1391   : > { %v2273_v30 = vadd.f32 1.0, %v3378_v21  ;;  %v2274_v17 = vmul.f32 %v2272_v52, %v2266_v61 }
0x1393   : > { %v2275_v31 = vmul.f32 %v2273_v30, %v2267_v2 }
0x1395   : > { %v2295_v26 = vpack.c.bf16 %v2275_v31, %v2274_v17 }
0x1397   : > { %3019 = vmatmul.mubr.bf16.vlgmr.msra.gmra.mrb[24].mxu0 %v2295_v26 }
0x146a   : > { %v2384_v9 = vpop.f32.mrb[24].mxu0 }
0x146b   : > { %v2385_v35 = vadd.f32 %v2699_v29, %v2384_v9  ;;  %v3020_v39 = vpop.f32.mrb[25].mxu0 }
0x146c   : > { %v2387_v57 = vpop.f32.mrb[26].mxu0 }
0x146d   : > { %v2388_v59 = vadd.f32 %v2699_v29, %v2387_v57  ;;  %v3021_v25 = vpop.f32.mrb[27].mxu0  ;;  %v2391_v42 = vadd.f32 %v2385_v35, %v4257_v44 }
0x146f   : > { %v2393_v46 = vsel %vm665_vm1, %v2391_v42, 0.0  ;;  %v2392_v45 = vadd.f32 %v2388_v59, %v4260_v33  ;;  %v3289_v33 = vld [vmem:[%s4396_s11] sm:$0xff]  }
0x1470   : > { %2394 = vadd.xlane.f32.xlu0 %v2393_v46  ;;  %3023 = vmatpush3.bf16.msra.mxu1 %v3289_v33 }
0x1471   : > { %v2396_v23 = vsel %vm665_vm1, %v2392_v45, 0.0  ;;  %3024 = vmatprep.subr.bf16.mxu1 %v3448_v40  ;;  %v2708_v40 = vld [vmem:[%s4397_s12] ss:$0 sm:$0xff] }
0x1472   : > { %2397 = vadd.xlane.f32.xlu1 %v2396_v23 }
0x1474   : > { %3025 = vmatpush3.bf16.msra.mxu1 %v3290_v32 }
0x14fd   : > { %v2395_v48 = vpop.xlane.xlu0 %2394 }
0x14fe   : > { %v2399_v47 = vmul.f32 0.03125, %v2395_v48 }
0x14ff   : > { %v2398_v41 = vpop.xlane.xlu1 %2397 }
0x1500   : > { %v2401_v24 = vsub.f32 %v2391_v42, %v2399_v47  ;;  %v2400_v36 = vmul.f32 0.03125, %v2398_v41 }
0x1502   : > { %v2402_v8 = vsub.f32 %v2392_v45, %v2400_v36  ;;  %v2403_v49 = vmul.f32 %v2401_v24, %v2401_v24 }
0x1504   : > { %v2405_v22 = vsel %vm665_vm1, %v2403_v49, 0.0  ;;  %v2404_v5 = vmul.f32 %v2402_v8, %v2402_v8 }
0x1505   : > { %2406 = vadd.xlane.f32.xlu0 %v2405_v22 }
0x1506   : > { %v2408_v44 = vsel %vm665_vm1, %v2404_v5, 0.0 }
0x1507   : > { %2409 = vadd.xlane.f32.xlu1 %v2408_v44 }
0x1592   : > { %v2407_v43 = vpop.xlane.xlu0 %2406 }
0x1593   : > { %v2411_v60 = vmul.f32 0.03125, %v2407_v43 }
0x1594   : > { %v2410_v62 = vpop.xlane.xlu1 %2409 }
0x1595   : > { %v2413_v1 = vadd.f32 1e-06, %v2411_v60  ;;  %v2412_v0 = vmul.f32 0.03125, %v2410_v62 }
0x1597   : > { %3379 = vrsqrt.f32 %v2413_v1  ;;  %v2414_v11 = vadd.f32 1e-06, %v2412_v0 }
0x1599   : > { %3381 = vrsqrt.f32 %v2414_v11 }
0x15a1   : > { %v3380_v50 = vpop.eup %3379 }
0x15a2   : > { %v2417_v6 = vmul.f32 %v3380_v50, %v2401_v24 }
0x15a3   : > { %v3382_v56 = vpop.eup %3381 }
0x15a4   : > { %v2418_v13 = vmul.f32 %v3382_v56, %v2402_v8 }
0x15a6   : > { %v2424_v12 = vpack.c.bf16 %v2418_v13, %v2417_v6 }
0x15a8   : > { %3027 = vmatmul.mubr.msk.bf16.vlgmr.msra.gmra.mrb[28].mxu1 %vm665_vm1, %v2424_v12 }
0x167b   : > { %v2480_v53 = vpop.f32.mrb[28].mxu1 }
0x167c   : > { %v2481_v55 = vadd.f32 %v2708_v40, %v2480_v53  ;;  %v3028_v10 = vpop.f32.mrb[29].mxu1 }
0x167d   : > { %v2483_v3 = vpop.f32.mrb[30].mxu1 }
0x167e   : > { %2487 = vst [vmem:[%s490_s26] sm:$0xff] %v2481_v55  ;;  %v2484_v18 = vadd.f32 %v2708_v40, %v2483_v3  ;;  %v3029_v19 = vpop.f32.mrb[31].mxu1 }
0x1680   : > { %2488 = vst [vmem:[%s490_s26 + $0x8] sm:$0xff] %v2484_v18 }
0x1681   : > { %3396 = shalt.err (!%p3393_p3)
}
0x1682   : > { %s3397_s17 = scalar_lea.hbm %s4342_s25, 256  ;;  %s3401_s16 = scalar_lea.hbm %s4400_s15, 512 }
0x1683   : > { %p3398_p4 = scmp.ne.s32.totalorder %s4342_s25, %s3397_s17  ;;  %p3402_p9 = scmp.lt.u32.totalorder %s4342_s25, %s4400_s15 }
0x1684   : > { %p3403_p10 = scmp.lt.u32.totalorder %s3401_s16, %s3397_s17  ;;  %p3405_p12 = scmp.lt.u32.totalorder %s3397_s17, %s4342_s25 }
0x1685   : > { %p3399_p7 = pnand %p3398_p4, %p3574_p5 }
0x1686   : > { %p3404_p11 = por %p3403_p10, %p3402_p9 }
0x1687   : > { %p3400_p8 = pneg %p3399_p7 }
0x1688   : > { %p3406_p13 = por %p3405_p12, %p3404_p11 }
0x168a   : > { %p3407_p0 = pnand %p3406_p13, %p3400_p8 }
0x168c   : > { %3410 = shalt.err (!%p3407_p0)
}
0x168d   : > { %s3454_s1 = smov 128   ;;  %s3455_s22 = smov 8  }
0x168e   : > { %3122 = dma.vmem_to_hbm [thread:$0]  (%p3574_p5), %s4337_s24, 256, %s4342_s25, %s4344_s27, %s3454_s1, %s3454_s1, %s3455_s22  }
0x168f PF: > { %p3128_p1 = scmp.ge.s32.totalorder %s3445_s21, 2  ;;  %s2518_s20 = sand.u32 1, %s3433_s18  }
0x1690   : > { %s2519_s17 = scalar_lea.sflag [#allocation3], %s2518_s20 }
0x1691   : > { %p3125_p2 = pnand %p3128_p1, %p3578_p6 }
0x1693   : > { %3428 = dma.done.wait (!%p3125_p2), %s2519_s17, 256  }
0x1694   : > { %3430 = vsyncadd (!%p3125_p2), %s2519_s17, 4294967040  ;;  %s4418_s21 = sld [smem:[#allocation6_spill]]  ;;  %s4419_s26 = sld [smem:[#allocation5_spill]] }
0x1695   : > { %s4420_s20 = sld [smem:[#allocation7_spill]]  ;;  %s4421_s18 = smov %s3437_s19 }
0x169a   : > { %p25_p3 = scmp.ge.s32.totalorder %s4418_s21, 4   ;;  %s4422_s19 = smov %s4419_s26 }
0x169c   :  { %27 = sbr.rel (!%p25_p3) target bundleno = 6 (0x6), region = 123 }
0x16a3   :  { %2524 = vsyncpa [#allocation3], 1 }
0x16a4   :  { %2526 = vsyncpa [#allocation3 + $0x1], 1 }

</bundles_post_ra>
